<compile_context>
chip_gen: v5e
topology: v5e:2x2
jax: 0.10.0
libtpu: 0.0.40
codegen_flags: <defaults>
</compile_context>

<pallas_src>
import functools

import jax
import jax.numpy as jnp
from jax.experimental import pallas as pl
from jax.experimental.pallas import tpu as pltpu


# ----------------------------------------------------------------------------
# Generation-aware knobs
# ----------------------------------------------------------------------------
def _vmem_limit_bytes():
    """~3/4 of physical VMEM (v5e/v6e 128MiB -> 96MiB, v7x 64MiB -> 48MiB)."""
    cap = None
    try:
        info = pltpu.get_tpu_info()
        cap = getattr(info, "vmem_capacity_bytes", None)
    except Exception:
        cap = None
    if not cap:
        return 48 * 1024 * 1024          # conservative fallback
    return min(int(cap) * 3 // 4, 100 * 1024 * 1024)


def _pick_spatial_tile(S, B, C, E, vmem_budget):
    """Largest multiple-of-128 tile dividing S that fits a rough VMEM budget."""
    if S <= 256:
        return S
    # per-lane f32 bytes: double-buffered in/out blocks + q/k/v + intermediates
    bytes_per_lane = 4 * (4 * B * C + 4 * B * E + 2 * E)
    max_ts = max(128, (vmem_budget // (2 * max(bytes_per_lane, 1))) // 128 * 128)
    t = min(max_ts, (S // 128) * 128)
    while t >= 128:
        if S % t == 0:
            return t
        t -= 128
    return S


# ----------------------------------------------------------------------------
# In-kernel helpers
# ----------------------------------------------------------------------------
def _roll_lanes(x, off):
    """y[:, s] = x[:, (s + off) % S]  (left-roll by off) via XLU lane rotate."""
    S = x.shape[1]
    shift = (-off) % S                    # pltpu.roll matches np.roll (right roll)
    if shift == 0:
        return x
    return pltpu.roll(x, shift, axis=1)


def _group_norm_swish(x, gamma, beta, n_groups, eps=1e-5):
    """Single-pass GroupNorm (sum & sum-of-squares) + Swish.  x: (C,S)."""
    C, S = x.shape
    cg = C // n_groups
    inv_n = 1.0 / float(cg * S)
    parts = []
    for g in range(n_groups):
        xs = x[g * cg:(g + 1) * cg, :]
        s1 = jnp.sum(jnp.sum(xs, axis=1, keepdims=True),
                     axis=0, keepdims=True) * inv_n
        s2 = jnp.sum(jnp.sum(xs * xs, axis=1, keepdims=True),
                     axis=0, keepdims=True) * inv_n
        var = s2 - s1 * s1
        parts.append((xs - s1) * jax.lax.rsqrt(var + eps))
    xn = jnp.concatenate(parts, axis=0) * gamma + beta
    # Swish = x * sigmoid(x)
    return xn * (1.0 / (1.0 + jnp.exp(-xn)))


def _conv3d_3x3x3(h, w_stk, bias, masks, hwd):
    """3x3x3 'same' conv as ONE K-stacked bf16 MXU matmul.

    h: (C,S) f32; w_stk: (C_out, 27*C) bf16; bias: (C_out,1) f32;
    masks: (27,1,S) f32 (boundary masks per tap).
    """
    H, W, D = hwd
    taps = []
    t = 0
    for kh in (-1, 0, 1):
        for kw in (-1, 0, 1):
            for kd in (-1, 0, 1):
                off = kh * (W * D) + kw * D + kd
                taps.append((_roll_lanes(h, off) * masks[t]).astype(jnp.bfloat16))
                t += 1
    hstk = jnp.concatenate(taps, axis=0)               # (27*C, S) bf16
    out = jnp.dot(w_stk, hstk, preferred_element_type=jnp.float32)
    return out + bias


# ----------------------------------------------------------------------------
# ResidualBlock kernel: GN -> Swish -> conv -> GN -> Swish -> conv -> + x
# ----------------------------------------------------------------------------
def residual_block_kernel(x_ref, mask_ref, pv_ref, w1_ref, w2_ref, o_ref,
                          *, n_groups, hwd):
    x = x_ref[0].astype(jnp.float32)                   # (C, S)
    masks = mask_ref[...]                              # (27, 1, S) f32
    pv = pv_ref[...]                                   # (C, 6) packed params
    g1, be1, c1b = pv[:, 0:1], pv[:, 1:2], pv[:, 2:3]
    g2, be2, c2b = pv[:, 3:4], pv[:, 4:5], pv[:, 5:6]

    h = _group_norm_swish(x, g1, be1, n_groups)
    h = _conv3d_3x3x3(h, w1_ref[...], c1b, masks, hwd)
    h = _group_norm_swish(h, g2, be2, n_groups)
    h = _conv3d_3x3x3(h, w2_ref[...], c2b, masks, hwd)
    o_ref[0] = (h + x).astype(o_ref.dtype)             # identity shortcut


def residual_block_pallas(xs, p, masks, n_groups, hwd, vmem_limit):
    B, C, S = xs.shape
    # pack the six (C,) params into one (C, 6) slab: g1, be1, c1b, g2, be2, c2b
    pvec = jnp.stack([p["g1"], p["be1"], p["c1b"],
                      p["g2"], p["be2"], p["c2b"]], axis=1).astype(jnp.float32)
    # (C_out, C_in, 3,3,3) -> (C_out, 27*C_in), column index = tap*C_in + c_in
    w1 = p["w1"].reshape(C, C, 27).transpose(0, 2, 1).reshape(C, 27 * C)
    w2 = p["w2"].reshape(C, C, 27).transpose(0, 2, 1).reshape(C, 27 * C)
    w1 = w1.astype(jnp.bfloat16)
    w2 = w2.astype(jnp.bfloat16)

    kernel = functools.partial(residual_block_kernel,
                               n_groups=n_groups, hwd=hwd)
    return pl.pallas_call(
        kernel,
        out_shape=jax.ShapeDtypeStruct((B, C, S), xs.dtype),
        grid=(B,),
        in_specs=[
            pl.BlockSpec((1, C, S), lambda b: (b, 0, 0)),
            pl.BlockSpec((27, 1, S), lambda b: (0, 0, 0)),
            pl.BlockSpec((C, 6), lambda b: (0, 0)),
            pl.BlockSpec((C, 27 * C), lambda b: (0, 0)),
            pl.BlockSpec((C, 27 * C), lambda b: (0, 0)),
        ],
        out_specs=pl.BlockSpec((1, C, S), lambda b: (b, 0, 0)),
        compiler_params=pltpu.CompilerParams(
            dimension_semantics=("parallel",),
            vmem_limit_bytes=vmem_limit),
    )(xs, masks, pvec, w1, w2)


# ----------------------------------------------------------------------------
# AttentionBlock kernel (fused q/k/v+in_proj and out_proj+output weights)
# ----------------------------------------------------------------------------
def attention_block_kernel(x_ref, wqkv_ref, bqkv_ref, wo_ref, bo_ref, o_ref,
                           *, n_heads, d_k):
    B, C, ts = x_ref.shape
    E = n_heads * d_k

    x = x_ref[...].astype(jnp.float32)              # (B, C, ts)
    wqkv = wqkv_ref[...]                            # (3E, C) bf16, scale in q
    bqkv = bqkv_ref[...]                            # (3E, 1) f32
    wo = wo_ref[...]                                # (C, E)  bf16
    bo = bo_ref[...]                                # (C, 1)  f32

    # One wide fused projection: (3E, C) @ (C, B*ts) on the MXU.
    xw = jnp.concatenate([x[b] for b in range(B)], axis=1).astype(jnp.bfloat16)
    proj = jnp.dot(wqkv, xw, preferred_element_type=jnp.float32) + bqkv

    qs, ks, vs = [], [], []
    for b in range(B):
        pb = proj[:, b * ts:(b + 1) * ts]
        qs.append(pb[0:E].reshape(n_heads, d_k, ts))
        ks.append(pb[E:2 * E].reshape(n_heads, d_k, ts))
        vs.append(pb[2 * E:3 * E].reshape(n_heads, d_k, ts))
    k4 = jnp.stack(ks)                              # (B, nh, dk, ts) f32
    v4 = jnp.stack(vs)                              # (B, nh, dk, ts) f32

    # nn.MultiheadAttention defaults to batch_first=False, so attention runs
    # over the length-B axis independently per spatial position.
    for i in range(B):
        qi = qs[i]                                           # (nh, dk, ts), pre-scaled
        s = jnp.sum(qi[None] * k4, axis=2)                   # (B, nh, ts) scores
        m = jnp.max(s, axis=0, keepdims=True)
        e = jnp.exp(s - m)
        denom = jnp.sum(e, axis=0, keepdims=True)
        r = pl.reciprocal(denom, approx=True)                # EUP; one Newton step
        r = r * (2.0 - denom * r)
        w = e * r                                            # softmax over keys
        a = jnp.sum(w[:, :, None, :] * v4, axis=0)           # (nh, dk, ts)
        a = a.reshape(E, ts).astype(jnp.bfloat16)
        out_i = jnp.dot(wo, a, preferred_element_type=jnp.float32) + bo + x[i]
        o_ref[i] = out_i.astype(o_ref.dtype)                 # lane-dense row store


def _fuse_attention_params(p, n_heads, d_k):
    E = n_heads * d_k
    scale = d_k ** (-0.5)
    win, binp = p["in_proj_w"], p["in_proj_b"]
    wq_f = (win[0:E] @ p["wq"]) * scale
    bq_f = (win[0:E] @ p["bq"] + binp[0:E]) * scale
    wk_f = win[E:2 * E] @ p["wk"]
    bk_f = win[E:2 * E] @ p["bk"] + binp[E:2 * E]
    wv_f = win[2 * E:] @ p["wv"]
    bv_f = win[2 * E:] @ p["bv"] + binp[2 * E:]
    w_qkv = jnp.concatenate([wq_f, wk_f, wv_f], axis=0)              # (3E, C)
    b_qkv = jnp.concatenate([bq_f, bk_f, bv_f], axis=0)[:, None]     # (3E, 1)
    wo_f = p["wout"] @ p["wop"]                                      # (C, E)
    bo_f = (p["wout"] @ p["bop"] + p["bout"])[:, None]               # (C, 1)
    return w_qkv, b_qkv, wo_f, bo_f


def attention_block_pallas(xs, p, n_heads, d_k, vmem_limit):
    B, C, S = xs.shape
    E = n_heads * d_k
    w_qkv, b_qkv, wo_f, bo_f = _fuse_attention_params(p, n_heads, d_k)
    w_qkv = w_qkv.astype(jnp.bfloat16)
    wo_f = wo_f.astype(jnp.bfloat16)
    ts = _pick_spatial_tile(S, B, C, E, vmem_limit)

    kernel = functools.partial(attention_block_kernel,
                               n_heads=n_heads, d_k=d_k)
    return pl.pallas_call(
        kernel,
        out_shape=jax.ShapeDtypeStruct((B, C, S), xs.dtype),
        grid=(S // ts,),
        in_specs=[
            pl.BlockSpec((B, C, ts), lambda i: (0, 0, i)),
            pl.BlockSpec((3 * E, C), lambda i: (0, 0)),
            pl.BlockSpec((3 * E, 1), lambda i: (0, 0)),
            pl.BlockSpec((C, E), lambda i: (0, 0)),
            pl.BlockSpec((C, 1), lambda i: (0, 0)),
        ],
        out_specs=pl.BlockSpec((B, C, ts), lambda i: (0, 0, i)),
        compiler_params=pltpu.CompilerParams(
            dimension_semantics=("parallel",),
            vmem_limit_bytes=vmem_limit),
    )(xs, w_qkv, b_qkv, wo_f, bo_f)


# ----------------------------------------------------------------------------
# MiddleBlock forward (res1 -> attn -> res2), all in (B, C, S) layout
# ----------------------------------------------------------------------------
def _conv_tap_masks(H, W, D):
    hh = jnp.arange(H).reshape(H, 1, 1)
    ww = jnp.arange(W).reshape(1, W, 1)
    dd = jnp.arange(D).reshape(1, 1, D)
    masks = []
    for kh in (-1, 0, 1):
        for kw in (-1, 0, 1):
            for kd in (-1, 0, 1):
                valid = ((hh + kh >= 0) & (hh + kh < H) &
                         (ww + kw >= 0) & (ww + kw < W) &
                         (dd + kd >= 0) & (dd + kd < D))
                masks.append(jnp.broadcast_to(valid, (H, W, D)).reshape(-1))
    return jnp.stack(masks).astype(jnp.float32)[:, None, :]      # (27, 1, S)


def middle_block_forward(x, params, *, n_heads=1, d_k=None, n_groups=4):
    B, C, H, W, D = x.shape
    if d_k is None:
        d_k = C
    S = H * W * D
    xs = x.reshape(B, C, S)                     # free reshape; S on the lane axis
    masks = _conv_tap_masks(H, W, D)
    vmem_limit = _vmem_limit_bytes()
    h = residual_block_pallas(xs, params["res1"], masks, n_groups, (H, W, D),
                              vmem_limit)
    h = attention_block_pallas(h, params["attn"], n_heads, d_k, vmem_limit)
    h = residual_block_pallas(h, params["res2"], masks, n_groups, (H, W, D),
                              vmem_limit)
    return h.reshape(B, C, H, W, D)


# ----------------------------------------------------------------------------
# Parameter init (PyTorch-style layouts; random values so the self-check
# exercises every term, incl. biases that PyTorch would zero-init)
# ----------------------------------------------------------------------------
def init_params(key, C, n_heads=1, d_k=None, n_groups=4):
    if d_k is None:
        d_k = C
    E = n_heads * d_k
    keys = iter(jax.random.split(key, 32))

    def unif(shape, bound):
        return jax.random.uniform(next(keys), shape, jnp.float32, -bound, bound)

    def res_params():
        cb = 1.0 / ((C * 27) ** 0.5)
        return dict(
            g1=1.0 + 0.1 * unif((C,), 1.0), be1=0.1 * unif((C,), 1.0),
            w1=unif((C, C, 3, 3, 3), cb), c1b=unif((C,), cb),
            g2=1.0 + 0.1 * unif((C,), 1.0), be2=0.1 * unif((C,), 1.0),
            w2=unif((C, C, 3, 3, 3), cb), c2b=unif((C,), cb),
        )

    res1 = res_params()
    res2 = res_params()

    lc = 1.0 / (C ** 0.5)
    le = 1.0 / (E ** 0.5)
    attn = dict(
        wq=unif((E, C), lc), bq=unif((E,), lc),
        wk=unif((E, C), lc), bk=unif((E,), lc),
        wv=unif((E, C), lc), bv=unif((E,), lc),
        in_proj_w=unif((3 * E, E), le),
        in_proj_b=0.1 * unif((3 * E,), 1.0),
        wop=unif((E, E), le), bop=0.1 * unif((E,), 1.0),
        wout=unif((C, E), le), bout=unif((C,), le),
    )
    return dict(res1=res1, attn=attn, res2=res2)


# ----------------------------------------------------------------------------
# Pure-JAX reference (independent math path, for the correctness check)
# ----------------------------------------------------------------------------
def _group_norm_ref(x, gamma, beta, n_groups, eps=1e-5):
    B, C, H, W, D = x.shape
    xg = x.reshape(B, n_groups, (C // n_groups) * H * W * D)
    mu = jnp.mean(xg, axis=-1, keepdims=True)
    var = jnp.mean((xg - mu) ** 2, axis=-1, keepdims=True)
    xn = ((xg - mu) / jnp.sqrt(var + eps)).reshape(B, C, H, W, D)
    return xn * gamma.reshape(1, C, 1, 1, 1) + beta.reshape(1, C, 1, 1, 1)


def _swish_ref(x):
    return x * jax.nn.sigmoid(x)


def _conv3d_ref(x, w, b):
    y = jax.lax.conv_general_dilated(
        x, w, window_strides=(1, 1, 1), padding=((1, 1), (1, 1), (1, 1)),
        dimension_numbers=("NCDHW", "OIDHW", "NCDHW"))
    return y + b.reshape(1, -1, 1, 1, 1)


def _residual_block_ref(x, p, n_groups):
    h = _conv3d_ref(_swish_ref(_group_norm_ref(x, p["g1"], p["be1"], n_groups)),
                    p["w1"], p["c1b"])
    h = _conv3d_ref(_swish_ref(_group_norm_ref(h, p["g2"], p["be2"], n_groups)),
                    p["w2"], p["c2b"])
    return h + x


def _attention_block_ref(x, p, n_heads, d_k):
    B, C, H, W, D = x.shape
    S = H * W * D
    E = n_heads * d_k
    xs = jnp.transpose(x.reshape(B, C, S), (0, 2, 1))        # (B, S, C)
    q = xs @ p["wq"].T + p["bq"]
    k = xs @ p["wk"].T + p["bk"]
    v = xs @ p["wv"].T + p["bv"]
    win, binp = p["in_proj_w"], p["in_proj_b"]
    # batch_first=False: axis 0 (=B) is the attention sequence.
    q2 = (q @ win[0:E].T + binp[0:E]).reshape(B, S, n_heads, d_k)
    k2 = (k @ win[E:2 * E].T + binp[E:2 * E]).reshape(B, S, n_heads, d_k)
    v2 = (v @ win[2 * E:].T + binp[2 * E:]).reshape(B, S, n_heads, d_k)
    scores = jnp.einsum("isnd,jsnd->snij", q2, k2) * (d_k ** (-0.5))
    attw = jax.nn.softmax(scores, axis=-1)
    attn = jnp.einsum("snij,jsnd->isnd", attw, v2).reshape(B, S, E)
    attn = attn @ p["wop"].T + p["bop"]
    res = attn @ p["wout"].T + p["bout"] + xs
    return jnp.transpose(res, (0, 2, 1)).reshape(B, C, H, W, D)


def middle_block_reference(x, params, *, n_heads=1, d_k=None, n_groups=4):
    if d_k is None:
        d_k = x.shape[1]
    h = _residual_block_ref(x, params["res1"], n_groups)
    h = _attention_block_ref(h, params["attn"], n_heads, d_k)
    return _residual_block_ref(h, params["res2"], n_groups)


# ----------------------------------------------------------------------------
if __name__ == "__main__":
    # S = H*W*D = 128 -> exactly one full lane-width per spatial tile.
    B, C, H, W, D = 2, 8, 4, 4, 8
    n_heads, n_groups = 1, 4
    d_k = C                              # AttentionBlock default: d_k = n_channels

    key = jax.random.PRNGKey(0)
    kx, kp = jax.random.split(key)
    x = jax.random.normal(kx, (B, C, H, W, D), jnp.float32)
    params = init_params(kp, C, n_heads, d_k, n_groups)

    y = middle_block_forward(x, params, n_heads=n_heads, d_k=d_k,
                             n_groups=n_groups)
    jax.block_until_ready(y)

    y_ref = middle_block_reference(x, params, n_heads=n_heads, d_k=d_k,
                                   n_groups=n_groups)
    assert y.shape == x.shape
    max_err = float(jnp.max(jnp.abs(y - y_ref)))
    # Tolerance accounts for bf16 MXU operands (f32 accumulation) in the convs
    # and attention projections.
    assert jnp.allclose(y, y_ref, atol=5e-2, rtol=5e-2), \
        f"mismatch vs JAX reference (max abs err {max_err})"

    print("KERNEL_OK")
</pallas_src>

<mosaic_0001>
module attributes {stable_mosaic.version = 11 : i64} {
  func.func @residual_block_kernel(%arg0: i32, %arg1: memref<1x8x128xf32, #tpu.memory_space<vmem>>, %arg2: memref<27x1x128xf32, #tpu.memory_space<vmem>>, %arg3: memref<8x6xf32, #tpu.memory_space<vmem>>, %arg4: memref<8x216xbf16, #tpu.memory_space<vmem>>, %arg5: memref<8x216xbf16, #tpu.memory_space<vmem>>, %arg6: memref<1x8x128xf32, #tpu.memory_space<vmem>>) attributes {dimension_semantics = [#tpu.dimension_semantics<parallel>], iteration_bounds = array<i64: 2>, scalar_prefetch = 0 : i64, scratch_operands = 0 : i64, tpu.core_type = #tpu.core_type<tc>, window_params = [{transform_indices = @transform_0, window_bounds = array<i64: 1, 8, 128>}, {pipeline_mode = #tpu.pipeline_mode<synchronous>, transform_indices = @transform_1, window_bounds = array<i64: 27, 1, 128>}, {pipeline_mode = #tpu.pipeline_mode<synchronous>, transform_indices = @transform_2, window_bounds = array<i64: 8, 6>}, {pipeline_mode = #tpu.pipeline_mode<synchronous>, transform_indices = @transform_3, window_bounds = array<i64: 8, 216>}, {pipeline_mode = #tpu.pipeline_mode<synchronous>, transform_indices = @transform_4, window_bounds = array<i64: 8, 216>}, {transform_indices = @transform_5, window_bounds = array<i64: 1, 8, 128>}]} {
    %c0 = arith.constant 0 : index
    %c0_0 = arith.constant 0 : index
    %c0_1 = arith.constant 0 : index
    %0 = vector.load %arg1[%c0, %c0_0, %c0_1] : memref<1x8x128xf32, #tpu.memory_space<vmem>>, vector<1x8x128xf32>
    %1 = vector.shape_cast %0 : vector<1x8x128xf32> to vector<8x128xf32>
    %c0_2 = arith.constant 0 : index
    %c0_3 = arith.constant 0 : index
    %c0_4 = arith.constant 0 : index
    %2 = vector.load %arg2[%c0_2, %c0_3, %c0_4] : memref<27x1x128xf32, #tpu.memory_space<vmem>>, vector<27x1x128xf32>
    %c0_5 = arith.constant 0 : index
    %c0_6 = arith.constant 0 : index
    %3 = vector.load %arg3[%c0_5, %c0_6] : memref<8x6xf32, #tpu.memory_space<vmem>>, vector<8x6xf32>
    %4 = vector.extract_strided_slice %3 {offsets = [0, 0], sizes = [8, 1], strides = [1, 1]} : vector<8x6xf32> to vector<8x1xf32>
    %5 = vector.extract_strided_slice %3 {offsets = [0, 1], sizes = [8, 1], strides = [1, 1]} : vector<8x6xf32> to vector<8x1xf32>
    %6 = vector.extract_strided_slice %3 {offsets = [0, 2], sizes = [8, 1], strides = [1, 1]} : vector<8x6xf32> to vector<8x1xf32>
    %7 = vector.extract_strided_slice %3 {offsets = [0, 3], sizes = [8, 1], strides = [1, 1]} : vector<8x6xf32> to vector<8x1xf32>
    %8 = vector.extract_strided_slice %3 {offsets = [0, 4], sizes = [8, 1], strides = [1, 1]} : vector<8x6xf32> to vector<8x1xf32>
    %9 = vector.extract_strided_slice %3 {offsets = [0, 5], sizes = [8, 1], strides = [1, 1]} : vector<8x6xf32> to vector<8x1xf32>
    %10 = vector.extract_strided_slice %1 {offsets = [0, 0], sizes = [2, 128], strides = [1, 1]} : vector<8x128xf32> to vector<2x128xf32>
    %cst = arith.constant dense<0.000000e+00> : vector<2xf32>
    %11 = vector.multi_reduction <add>, %10, %cst [1] : vector<2x128xf32> to vector<2xf32>
    %12 = vector.shape_cast %11 : vector<2xf32> to vector<2x1xf32>
    %cst_7 = arith.constant dense<0.000000e+00> : vector<1xf32>
    %13 = vector.multi_reduction <add>, %12, %cst_7 [0] : vector<2x1xf32> to vector<1xf32>
    %14 = vector.shape_cast %13 : vector<1xf32> to vector<1x1xf32>
    %cst_8 = arith.constant 3.906250e-03 : f32
    %15 = vector.broadcast %cst_8 : f32 to vector<1x1xf32>
    %16 = arith.mulf %14, %15 : vector<1x1xf32>
    %17 = arith.mulf %10, %10 : vector<2x128xf32>
    %cst_9 = arith.constant dense<0.000000e+00> : vector<2xf32>
    %18 = vector.multi_reduction <add>, %17, %cst_9 [1] : vector<2x128xf32> to vector<2xf32>
    %19 = vector.shape_cast %18 : vector<2xf32> to vector<2x1xf32>
    %cst_10 = arith.constant dense<0.000000e+00> : vector<1xf32>
    %20 = vector.multi_reduction <add>, %19, %cst_10 [0] : vector<2x1xf32> to vector<1xf32>
    %21 = vector.shape_cast %20 : vector<1xf32> to vector<1x1xf32>
    %cst_11 = arith.constant 3.906250e-03 : f32
    %22 = vector.broadcast %cst_11 : f32 to vector<1x1xf32>
    %23 = arith.mulf %21, %22 : vector<1x1xf32>
    %24 = arith.mulf %16, %16 : vector<1x1xf32>
    %25 = arith.subf %23, %24 : vector<1x1xf32>
    %26 = vector.broadcast %16 : vector<1x1xf32> to vector<2x128xf32>
    %27 = arith.subf %10, %26 : vector<2x128xf32>
    %cst_12 = arith.constant 9.99999974E-6 : f32
    %28 = vector.broadcast %cst_12 : f32 to vector<1x1xf32>
    %29 = arith.addf %25, %28 : vector<1x1xf32>
    %30 = math.rsqrt %29 : vector<1x1xf32>
    %31 = vector.broadcast %30 : vector<1x1xf32> to vector<2x128xf32>
    %32 = arith.mulf %27, %31 : vector<2x128xf32>
    %33 = vector.extract_strided_slice %1 {offsets = [2, 0], sizes = [2, 128], strides = [1, 1]} : vector<8x128xf32> to vector<2x128xf32>
    %cst_13 = arith.constant dense<0.000000e+00> : vector<2xf32>
    %34 = vector.multi_reduction <add>, %33, %cst_13 [1] : vector<2x128xf32> to vector<2xf32>
    %35 = vector.shape_cast %34 : vector<2xf32> to vector<2x1xf32>
    %cst_14 = arith.constant dense<0.000000e+00> : vector<1xf32>
    %36 = vector.multi_reduction <add>, %35, %cst_14 [0] : vector<2x1xf32> to vector<1xf32>
    %37 = vector.shape_cast %36 : vector<1xf32> to vector<1x1xf32>
    %cst_15 = arith.constant 3.906250e-03 : f32
    %38 = vector.broadcast %cst_15 : f32 to vector<1x1xf32>
    %39 = arith.mulf %37, %38 : vector<1x1xf32>
    %40 = arith.mulf %33, %33 : vector<2x128xf32>
    %cst_16 = arith.constant dense<0.000000e+00> : vector<2xf32>
    %41 = vector.multi_reduction <add>, %40, %cst_16 [1] : vector<2x128xf32> to vector<2xf32>
    %42 = vector.shape_cast %41 : vector<2xf32> to vector<2x1xf32>
    %cst_17 = arith.constant dense<0.000000e+00> : vector<1xf32>
    %43 = vector.multi_reduction <add>, %42, %cst_17 [0] : vector<2x1xf32> to vector<1xf32>
    %44 = vector.shape_cast %43 : vector<1xf32> to vector<1x1xf32>
    %cst_18 = arith.constant 3.906250e-03 : f32
    %45 = vector.broadcast %cst_18 : f32 to vector<1x1xf32>
    %46 = arith.mulf %44, %45 : vector<1x1xf32>
    %47 = arith.mulf %39, %39 : vector<1x1xf32>
    %48 = arith.subf %46, %47 : vector<1x1xf32>
    %49 = vector.broadcast %39 : vector<1x1xf32> to vector<2x128xf32>
    %50 = arith.subf %33, %49 : vector<2x128xf32>
    %cst_19 = arith.constant 9.99999974E-6 : f32
    %51 = vector.broadcast %cst_19 : f32 to vector<1x1xf32>
    %52 = arith.addf %48, %51 : vector<1x1xf32>
    %53 = math.rsqrt %52 : vector<1x1xf32>
    %54 = vector.broadcast %53 : vector<1x1xf32> to vector<2x128xf32>
    %55 = arith.mulf %50, %54 : vector<2x128xf32>
    %56 = vector.extract_strided_slice %1 {offsets = [4, 0], sizes = [2, 128], strides = [1, 1]} : vector<8x128xf32> to vector<2x128xf32>
    %cst_20 = arith.constant dense<0.000000e+00> : vector<2xf32>
    %57 = vector.multi_reduction <add>, %56, %cst_20 [1] : vector<2x128xf32> to vector<2xf32>
    %58 = vector.shape_cast %57 : vector<2xf32> to vector<2x1xf32>
    %cst_21 = arith.constant dense<0.000000e+00> : vector<1xf32>
    %59 = vector.multi_reduction <add>, %58, %cst_21 [0] : vector<2x1xf32> to vector<1xf32>
    %60 = vector.shape_cast %59 : vector<1xf32> to vector<1x1xf32>
    %cst_22 = arith.constant 3.906250e-03 : f32
    %61 = vector.broadcast %cst_22 : f32 to vector<1x1xf32>
    %62 = arith.mulf %60, %61 : vector<1x1xf32>
    %63 = arith.mulf %56, %56 : vector<2x128xf32>
    %cst_23 = arith.constant dense<0.000000e+00> : vector<2xf32>
    %64 = vector.multi_reduction <add>, %63, %cst_23 [1] : vector<2x128xf32> to vector<2xf32>
    %65 = vector.shape_cast %64 : vector<2xf32> to vector<2x1xf32>
    %cst_24 = arith.constant dense<0.000000e+00> : vector<1xf32>
    %66 = vector.multi_reduction <add>, %65, %cst_24 [0] : vector<2x1xf32> to vector<1xf32>
    %67 = vector.shape_cast %66 : vector<1xf32> to vector<1x1xf32>
    %cst_25 = arith.constant 3.906250e-03 : f32
    %68 = vector.broadcast %cst_25 : f32 to vector<1x1xf32>
    %69 = arith.mulf %67, %68 : vector<1x1xf32>
    %70 = arith.mulf %62, %62 : vector<1x1xf32>
    %71 = arith.subf %69, %70 : vector<1x1xf32>
    %72 = vector.broadcast %62 : vector<1x1xf32> to vector<2x128xf32>
    %73 = arith.subf %56, %72 : vector<2x128xf32>
    %cst_26 = arith.constant 9.99999974E-6 : f32
    %74 = vector.broadcast %cst_26 : f32 to vector<1x1xf32>
    %75 = arith.addf %71, %74 : vector<1x1xf32>
    %76 = math.rsqrt %75 : vector<1x1xf32>
    %77 = vector.broadcast %76 : vector<1x1xf32> to vector<2x128xf32>
    %78 = arith.mulf %73, %77 : vector<2x128xf32>
    %79 = vector.extract_strided_slice %1 {offsets = [6, 0], sizes = [2, 128], strides = [1, 1]} : vector<8x128xf32> to vector<2x128xf32>
    %cst_27 = arith.constant dense<0.000000e+00> : vector<2xf32>
    %80 = vector.multi_reduction <add>, %79, %cst_27 [1] : vector<2x128xf32> to vector<2xf32>
    %81 = vector.shape_cast %80 : vector<2xf32> to vector<2x1xf32>
    %cst_28 = arith.constant dense<0.000000e+00> : vector<1xf32>
    %82 = vector.multi_reduction <add>, %81, %cst_28 [0] : vector<2x1xf32> to vector<1xf32>
    %83 = vector.shape_cast %82 : vector<1xf32> to vector<1x1xf32>
    %cst_29 = arith.constant 3.906250e-03 : f32
    %84 = vector.broadcast %cst_29 : f32 to vector<1x1xf32>
    %85 = arith.mulf %83, %84 : vector<1x1xf32>
    %86 = arith.mulf %79, %79 : vector<2x128xf32>
    %cst_30 = arith.constant dense<0.000000e+00> : vector<2xf32>
    %87 = vector.multi_reduction <add>, %86, %cst_30 [1] : vector<2x128xf32> to vector<2xf32>
    %88 = vector.shape_cast %87 : vector<2xf32> to vector<2x1xf32>
    %cst_31 = arith.constant dense<0.000000e+00> : vector<1xf32>
    %89 = vector.multi_reduction <add>, %88, %cst_31 [0] : vector<2x1xf32> to vector<1xf32>
    %90 = vector.shape_cast %89 : vector<1xf32> to vector<1x1xf32>
    %cst_32 = arith.constant 3.906250e-03 : f32
    %91 = vector.broadcast %cst_32 : f32 to vector<1x1xf32>
    %92 = arith.mulf %90, %91 : vector<1x1xf32>
    %93 = arith.mulf %85, %85 : vector<1x1xf32>
    %94 = arith.subf %92, %93 : vector<1x1xf32>
    %95 = vector.broadcast %85 : vector<1x1xf32> to vector<2x128xf32>
    %96 = arith.subf %79, %95 : vector<2x128xf32>
    %cst_33 = arith.constant 9.99999974E-6 : f32
    %97 = vector.broadcast %cst_33 : f32 to vector<1x1xf32>
    %98 = arith.addf %94, %97 : vector<1x1xf32>
    %99 = math.rsqrt %98 : vector<1x1xf32>
    %100 = vector.broadcast %99 : vector<1x1xf32> to vector<2x128xf32>
    %101 = arith.mulf %96, %100 : vector<2x128xf32>
    %102 = tpu.concatenate %32, %55, %78, %101 in 0 : vector<2x128xf32>, vector<2x128xf32>, vector<2x128xf32>, vector<2x128xf32> -> vector<8x128xf32>
    %103 = vector.broadcast %4 : vector<8x1xf32> to vector<8x128xf32>
    %104 = arith.mulf %102, %103 : vector<8x128xf32>
    %105 = vector.broadcast %5 : vector<8x1xf32> to vector<8x128xf32>
    %106 = arith.addf %104, %105 : vector<8x128xf32>
    %cst_34 = arith.constant 0.000000e+00 : f32
    %107 = vector.broadcast %cst_34 : f32 to vector<8x128xf32>
    %108 = arith.subf %107, %106 : vector<8x128xf32>
    %109 = math.exp %108 : vector<8x128xf32>
    %cst_35 = arith.constant 1.000000e+00 : f32
    %110 = vector.broadcast %cst_35 : f32 to vector<8x128xf32>
    %111 = arith.addf %110, %109 : vector<8x128xf32>
    %cst_36 = arith.constant 1.000000e+00 : f32
    %112 = vector.broadcast %cst_36 : f32 to vector<8x128xf32>
    %113 = arith.divf %112, %111 : vector<8x128xf32>
    %114 = arith.mulf %106, %113 : vector<8x128xf32>
    %c0_37 = arith.constant 0 : index
    %c0_38 = arith.constant 0 : index
    %115 = vector.load %arg4[%c0_37, %c0_38] : memref<8x216xbf16, #tpu.memory_space<vmem>>, vector<8x216xbf16>
    %c41_i32 = arith.constant 41 : i32
    %116 = tpu.dynamic_rotate %114 by %c41_i32 dim 1 : vector<8x128xf32>, i32 -> vector<8x128xf32>
    %117 = vector.extract_strided_slice %2 {offsets = [0, 0, 0], sizes = [1, 1, 128], strides = [1, 1, 1]} : vector<27x1x128xf32> to vector<1x1x128xf32>
    %118 = vector.shape_cast %117 : vector<1x1x128xf32> to vector<1x128xf32>
    %119 = vector.broadcast %118 : vector<1x128xf32> to vector<8x128xf32>
    %120 = arith.mulf %116, %119 : vector<8x128xf32>
    %121 = arith.truncf %120 : vector<8x128xf32> to vector<8x128xbf16>
    %c40_i32 = arith.constant 40 : i32
    %122 = tpu.dynamic_rotate %114 by %c40_i32 dim 1 : vector<8x128xf32>, i32 -> vector<8x128xf32>
    %123 = vector.extract_strided_slice %2 {offsets = [1, 0, 0], sizes = [1, 1, 128], strides = [1, 1, 1]} : vector<27x1x128xf32> to vector<1x1x128xf32>
    %124 = vector.shape_cast %123 : vector<1x1x128xf32> to vector<1x128xf32>
    %125 = vector.broadcast %124 : vector<1x128xf32> to vector<8x128xf32>
    %126 = arith.mulf %122, %125 : vector<8x128xf32>
    %127 = arith.truncf %126 : vector<8x128xf32> to vector<8x128xbf16>
    %c39_i32 = arith.constant 39 : i32
    %128 = tpu.dynamic_rotate %114 by %c39_i32 dim 1 : vector<8x128xf32>, i32 -> vector<8x128xf32>
    %129 = vector.extract_strided_slice %2 {offsets = [2, 0, 0], sizes = [1, 1, 128], strides = [1, 1, 1]} : vector<27x1x128xf32> to vector<1x1x128xf32>
    %130 = vector.shape_cast %129 : vector<1x1x128xf32> to vector<1x128xf32>
    %131 = vector.broadcast %130 : vector<1x128xf32> to vector<8x128xf32>
    %132 = arith.mulf %128, %131 : vector<8x128xf32>
    %133 = arith.truncf %132 : vector<8x128xf32> to vector<8x128xbf16>
    %c33_i32 = arith.constant 33 : i32
    %134 = tpu.dynamic_rotate %114 by %c33_i32 dim 1 : vector<8x128xf32>, i32 -> vector<8x128xf32>
    %135 = vector.extract_strided_slice %2 {offsets = [3, 0, 0], sizes = [1, 1, 128], strides = [1, 1, 1]} : vector<27x1x128xf32> to vector<1x1x128xf32>
    %136 = vector.shape_cast %135 : vector<1x1x128xf32> to vector<1x128xf32>
    %137 = vector.broadcast %136 : vector<1x128xf32> to vector<8x128xf32>
    %138 = arith.mulf %134, %137 : vector<8x128xf32>
    %139 = arith.truncf %138 : vector<8x128xf32> to vector<8x128xbf16>
    %c32_i32 = arith.constant 32 : i32
    %140 = tpu.dynamic_rotate %114 by %c32_i32 dim 1 : vector<8x128xf32>, i32 -> vector<8x128xf32>
    %141 = vector.extract_strided_slice %2 {offsets = [4, 0, 0], sizes = [1, 1, 128], strides = [1, 1, 1]} : vector<27x1x128xf32> to vector<1x1x128xf32>
    %142 = vector.shape_cast %141 : vector<1x1x128xf32> to vector<1x128xf32>
    %143 = vector.broadcast %142 : vector<1x128xf32> to vector<8x128xf32>
    %144 = arith.mulf %140, %143 : vector<8x128xf32>
    %145 = arith.truncf %144 : vector<8x128xf32> to vector<8x128xbf16>
    %c31_i32 = arith.constant 31 : i32
    %146 = tpu.dynamic_rotate %114 by %c31_i32 dim 1 : vector<8x128xf32>, i32 -> vector<8x128xf32>
    %147 = vector.extract_strided_slice %2 {offsets = [5, 0, 0], sizes = [1, 1, 128], strides = [1, 1, 1]} : vector<27x1x128xf32> to vector<1x1x128xf32>
    %148 = vector.shape_cast %147 : vector<1x1x128xf32> to vector<1x128xf32>
    %149 = vector.broadcast %148 : vector<1x128xf32> to vector<8x128xf32>
    %150 = arith.mulf %146, %149 : vector<8x128xf32>
    %151 = arith.truncf %150 : vector<8x128xf32> to vector<8x128xbf16>
    %c25_i32 = arith.constant 25 : i32
    %152 = tpu.dynamic_rotate %114 by %c25_i32 dim 1 : vector<8x128xf32>, i32 -> vector<8x128xf32>
    %153 = vector.extract_strided_slice %2 {offsets = [6, 0, 0], sizes = [1, 1, 128], strides = [1, 1, 1]} : vector<27x1x128xf32> to vector<1x1x128xf32>
    %154 = vector.shape_cast %153 : vector<1x1x128xf32> to vector<1x128xf32>
    %155 = vector.broadcast %154 : vector<1x128xf32> to vector<8x128xf32>
    %156 = arith.mulf %152, %155 : vector<8x128xf32>
    %157 = arith.truncf %156 : vector<8x128xf32> to vector<8x128xbf16>
    %c24_i32 = arith.constant 24 : i32
    %158 = tpu.dynamic_rotate %114 by %c24_i32 dim 1 : vector<8x128xf32>, i32 -> vector<8x128xf32>
    %159 = vector.extract_strided_slice %2 {offsets = [7, 0, 0], sizes = [1, 1, 128], strides = [1, 1, 1]} : vector<27x1x128xf32> to vector<1x1x128xf32>
    %160 = vector.shape_cast %159 : vector<1x1x128xf32> to vector<1x128xf32>
    %161 = vector.broadcast %160 : vector<1x128xf32> to vector<8x128xf32>
    %162 = arith.mulf %158, %161 : vector<8x128xf32>
    %163 = arith.truncf %162 : vector<8x128xf32> to vector<8x128xbf16>
    %c23_i32 = arith.constant 23 : i32
    %164 = tpu.dynamic_rotate %114 by %c23_i32 dim 1 : vector<8x128xf32>, i32 -> vector<8x128xf32>
    %165 = vector.extract_strided_slice %2 {offsets = [8, 0, 0], sizes = [1, 1, 128], strides = [1, 1, 1]} : vector<27x1x128xf32> to vector<1x1x128xf32>
    %166 = vector.shape_cast %165 : vector<1x1x128xf32> to vector<1x128xf32>
    %167 = vector.broadcast %166 : vector<1x128xf32> to vector<8x128xf32>
    %168 = arith.mulf %164, %167 : vector<8x128xf32>
    %169 = arith.truncf %168 : vector<8x128xf32> to vector<8x128xbf16>
    %c9_i32 = arith.constant 9 : i32
    %170 = tpu.dynamic_rotate %114 by %c9_i32 dim 1 : vector<8x128xf32>, i32 -> vector<8x128xf32>
    %171 = vector.extract_strided_slice %2 {offsets = [9, 0, 0], sizes = [1, 1, 128], strides = [1, 1, 1]} : vector<27x1x128xf32> to vector<1x1x128xf32>
    %172 = vector.shape_cast %171 : vector<1x1x128xf32> to vector<1x128xf32>
    %173 = vector.broadcast %172 : vector<1x128xf32> to vector<8x128xf32>
    %174 = arith.mulf %170, %173 : vector<8x128xf32>
    %175 = arith.truncf %174 : vector<8x128xf32> to vector<8x128xbf16>
    %c8_i32 = arith.constant 8 : i32
    %176 = tpu.dynamic_rotate %114 by %c8_i32 dim 1 : vector<8x128xf32>, i32 -> vector<8x128xf32>
    %177 = vector.extract_strided_slice %2 {offsets = [10, 0, 0], sizes = [1, 1, 128], strides = [1, 1, 1]} : vector<27x1x128xf32> to vector<1x1x128xf32>
    %178 = vector.shape_cast %177 : vector<1x1x128xf32> to vector<1x128xf32>
    %179 = vector.broadcast %178 : vector<1x128xf32> to vector<8x128xf32>
    %180 = arith.mulf %176, %179 : vector<8x128xf32>
    %181 = arith.truncf %180 : vector<8x128xf32> to vector<8x128xbf16>
    %c7_i32 = arith.constant 7 : i32
    %182 = tpu.dynamic_rotate %114 by %c7_i32 dim 1 : vector<8x128xf32>, i32 -> vector<8x128xf32>
    %183 = vector.extract_strided_slice %2 {offsets = [11, 0, 0], sizes = [1, 1, 128], strides = [1, 1, 1]} : vector<27x1x128xf32> to vector<1x1x128xf32>
    %184 = vector.shape_cast %183 : vector<1x1x128xf32> to vector<1x128xf32>
    %185 = vector.broadcast %184 : vector<1x128xf32> to vector<8x128xf32>
    %186 = arith.mulf %182, %185 : vector<8x128xf32>
    %187 = arith.truncf %186 : vector<8x128xf32> to vector<8x128xbf16>
    %c1_i32 = arith.constant 1 : i32
    %188 = tpu.dynamic_rotate %114 by %c1_i32 dim 1 : vector<8x128xf32>, i32 -> vector<8x128xf32>
    %189 = vector.extract_strided_slice %2 {offsets = [12, 0, 0], sizes = [1, 1, 128], strides = [1, 1, 1]} : vector<27x1x128xf32> to vector<1x1x128xf32>
    %190 = vector.shape_cast %189 : vector<1x1x128xf32> to vector<1x128xf32>
    %191 = vector.broadcast %190 : vector<1x128xf32> to vector<8x128xf32>
    %192 = arith.mulf %188, %191 : vector<8x128xf32>
    %193 = arith.truncf %192 : vector<8x128xf32> to vector<8x128xbf16>
    %194 = vector.extract_strided_slice %2 {offsets = [13, 0, 0], sizes = [1, 1, 128], strides = [1, 1, 1]} : vector<27x1x128xf32> to vector<1x1x128xf32>
    %195 = vector.shape_cast %194 : vector<1x1x128xf32> to vector<1x128xf32>
    %196 = vector.broadcast %195 : vector<1x128xf32> to vector<8x128xf32>
    %197 = arith.mulf %114, %196 : vector<8x128xf32>
    %198 = arith.truncf %197 : vector<8x128xf32> to vector<8x128xbf16>
    %c127_i32 = arith.constant 127 : i32
    %199 = tpu.dynamic_rotate %114 by %c127_i32 dim 1 : vector<8x128xf32>, i32 -> vector<8x128xf32>
    %200 = vector.extract_strided_slice %2 {offsets = [14, 0, 0], sizes = [1, 1, 128], strides = [1, 1, 1]} : vector<27x1x128xf32> to vector<1x1x128xf32>
    %201 = vector.shape_cast %200 : vector<1x1x128xf32> to vector<1x128xf32>
    %202 = vector.broadcast %201 : vector<1x128xf32> to vector<8x128xf32>
    %203 = arith.mulf %199, %202 : vector<8x128xf32>
    %204 = arith.truncf %203 : vector<8x128xf32> to vector<8x128xbf16>
    %c121_i32 = arith.constant 121 : i32
    %205 = tpu.dynamic_rotate %114 by %c121_i32 dim 1 : vector<8x128xf32>, i32 -> vector<8x128xf32>
    %206 = vector.extract_strided_slice %2 {offsets = [15, 0, 0], sizes = [1, 1, 128], strides = [1, 1, 1]} : vector<27x1x128xf32> to vector<1x1x128xf32>
    %207 = vector.shape_cast %206 : vector<1x1x128xf32> to vector<1x128xf32>
    %208 = vector.broadcast %207 : vector<1x128xf32> to vector<8x128xf32>
    %209 = arith.mulf %205, %208 : vector<8x128xf32>
    %210 = arith.truncf %209 : vector<8x128xf32> to vector<8x128xbf16>
    %c120_i32 = arith.constant 120 : i32
    %211 = tpu.dynamic_rotate %114 by %c120_i32 dim 1 : vector<8x128xf32>, i32 -> vector<8x128xf32>
    %212 = vector.extract_strided_slice %2 {offsets = [16, 0, 0], sizes = [1, 1, 128], strides = [1, 1, 1]} : vector<27x1x128xf32> to vector<1x1x128xf32>
    %213 = vector.shape_cast %212 : vector<1x1x128xf32> to vector<1x128xf32>
    %214 = vector.broadcast %213 : vector<1x128xf32> to vector<8x128xf32>
    %215 = arith.mulf %211, %214 : vector<8x128xf32>
    %216 = arith.truncf %215 : vector<8x128xf32> to vector<8x128xbf16>
    %c119_i32 = arith.constant 119 : i32
    %217 = tpu.dynamic_rotate %114 by %c119_i32 dim 1 : vector<8x128xf32>, i32 -> vector<8x128xf32>
    %218 = vector.extract_strided_slice %2 {offsets = [17, 0, 0], sizes = [1, 1, 128], strides = [1, 1, 1]} : vector<27x1x128xf32> to vector<1x1x128xf32>
    %219 = vector.shape_cast %218 : vector<1x1x128xf32> to vector<1x128xf32>
    %220 = vector.broadcast %219 : vector<1x128xf32> to vector<8x128xf32>
    %221 = arith.mulf %217, %220 : vector<8x128xf32>
    %222 = arith.truncf %221 : vector<8x128xf32> to vector<8x128xbf16>
    %c105_i32 = arith.constant 105 : i32
    %223 = tpu.dynamic_rotate %114 by %c105_i32 dim 1 : vector<8x128xf32>, i32 -> vector<8x128xf32>
    %224 = vector.extract_strided_slice %2 {offsets = [18, 0, 0], sizes = [1, 1, 128], strides = [1, 1, 1]} : vector<27x1x128xf32> to vector<1x1x128xf32>
    %225 = vector.shape_cast %224 : vector<1x1x128xf32> to vector<1x128xf32>
    %226 = vector.broadcast %225 : vector<1x128xf32> to vector<8x128xf32>
    %227 = arith.mulf %223, %226 : vector<8x128xf32>
    %228 = arith.truncf %227 : vector<8x128xf32> to vector<8x128xbf16>
    %c104_i32 = arith.constant 104 : i32
    %229 = tpu.dynamic_rotate %114 by %c104_i32 dim 1 : vector<8x128xf32>, i32 -> vector<8x128xf32>
    %230 = vector.extract_strided_slice %2 {offsets = [19, 0, 0], sizes = [1, 1, 128], strides = [1, 1, 1]} : vector<27x1x128xf32> to vector<1x1x128xf32>
    %231 = vector.shape_cast %230 : vector<1x1x128xf32> to vector<1x128xf32>
    %232 = vector.broadcast %231 : vector<1x128xf32> to vector<8x128xf32>
    %233 = arith.mulf %229, %232 : vector<8x128xf32>
    %234 = arith.truncf %233 : vector<8x128xf32> to vector<8x128xbf16>
    %c103_i32 = arith.constant 103 : i32
    %235 = tpu.dynamic_rotate %114 by %c103_i32 dim 1 : vector<8x128xf32>, i32 -> vector<8x128xf32>
    %236 = vector.extract_strided_slice %2 {offsets = [20, 0, 0], sizes = [1, 1, 128], strides = [1, 1, 1]} : vector<27x1x128xf32> to vector<1x1x128xf32>
    %237 = vector.shape_cast %236 : vector<1x1x128xf32> to vector<1x128xf32>
    %238 = vector.broadcast %237 : vector<1x128xf32> to vector<8x128xf32>
    %239 = arith.mulf %235, %238 : vector<8x128xf32>
    %240 = arith.truncf %239 : vector<8x128xf32> to vector<8x128xbf16>
    %c97_i32 = arith.constant 97 : i32
    %241 = tpu.dynamic_rotate %114 by %c97_i32 dim 1 : vector<8x128xf32>, i32 -> vector<8x128xf32>
    %242 = vector.extract_strided_slice %2 {offsets = [21, 0, 0], sizes = [1, 1, 128], strides = [1, 1, 1]} : vector<27x1x128xf32> to vector<1x1x128xf32>
    %243 = vector.shape_cast %242 : vector<1x1x128xf32> to vector<1x128xf32>
    %244 = vector.broadcast %243 : vector<1x128xf32> to vector<8x128xf32>
    %245 = arith.mulf %241, %244 : vector<8x128xf32>
    %246 = arith.truncf %245 : vector<8x128xf32> to vector<8x128xbf16>
    %c96_i32 = arith.constant 96 : i32
    %247 = tpu.dynamic_rotate %114 by %c96_i32 dim 1 : vector<8x128xf32>, i32 -> vector<8x128xf32>
    %248 = vector.extract_strided_slice %2 {offsets = [22, 0, 0], sizes = [1, 1, 128], strides = [1, 1, 1]} : vector<27x1x128xf32> to vector<1x1x128xf32>
    %249 = vector.shape_cast %248 : vector<1x1x128xf32> to vector<1x128xf32>
    %250 = vector.broadcast %249 : vector<1x128xf32> to vector<8x128xf32>
    %251 = arith.mulf %247, %250 : vector<8x128xf32>
    %252 = arith.truncf %251 : vector<8x128xf32> to vector<8x128xbf16>
    %c95_i32 = arith.constant 95 : i32
    %253 = tpu.dynamic_rotate %114 by %c95_i32 dim 1 : vector<8x128xf32>, i32 -> vector<8x128xf32>
    %254 = vector.extract_strided_slice %2 {offsets = [23, 0, 0], sizes = [1, 1, 128], strides = [1, 1, 1]} : vector<27x1x128xf32> to vector<1x1x128xf32>
    %255 = vector.shape_cast %254 : vector<1x1x128xf32> to vector<1x128xf32>
    %256 = vector.broadcast %255 : vector<1x128xf32> to vector<8x128xf32>
    %257 = arith.mulf %253, %256 : vector<8x128xf32>
    %258 = arith.truncf %257 : vector<8x128xf32> to vector<8x128xbf16>
    %c89_i32 = arith.constant 89 : i32
    %259 = tpu.dynamic_rotate %114 by %c89_i32 dim 1 : vector<8x128xf32>, i32 -> vector<8x128xf32>
    %260 = vector.extract_strided_slice %2 {offsets = [24, 0, 0], sizes = [1, 1, 128], strides = [1, 1, 1]} : vector<27x1x128xf32> to vector<1x1x128xf32>
    %261 = vector.shape_cast %260 : vector<1x1x128xf32> to vector<1x128xf32>
    %262 = vector.broadcast %261 : vector<1x128xf32> to vector<8x128xf32>
    %263 = arith.mulf %259, %262 : vector<8x128xf32>
    %264 = arith.truncf %263 : vector<8x128xf32> to vector<8x128xbf16>
    %c88_i32 = arith.constant 88 : i32
    %265 = tpu.dynamic_rotate %114 by %c88_i32 dim 1 : vector<8x128xf32>, i32 -> vector<8x128xf32>
    %266 = vector.extract_strided_slice %2 {offsets = [25, 0, 0], sizes = [1, 1, 128], strides = [1, 1, 1]} : vector<27x1x128xf32> to vector<1x1x128xf32>
    %267 = vector.shape_cast %266 : vector<1x1x128xf32> to vector<1x128xf32>
    %268 = vector.broadcast %267 : vector<1x128xf32> to vector<8x128xf32>
    %269 = arith.mulf %265, %268 : vector<8x128xf32>
    %270 = arith.truncf %269 : vector<8x128xf32> to vector<8x128xbf16>
    %c87_i32 = arith.constant 87 : i32
    %271 = tpu.dynamic_rotate %114 by %c87_i32 dim 1 : vector<8x128xf32>, i32 -> vector<8x128xf32>
    %272 = vector.extract_strided_slice %2 {offsets = [26, 0, 0], sizes = [1, 1, 128], strides = [1, 1, 1]} : vector<27x1x128xf32> to vector<1x1x128xf32>
    %273 = vector.shape_cast %272 : vector<1x1x128xf32> to vector<1x128xf32>
    %274 = vector.broadcast %273 : vector<1x128xf32> to vector<8x128xf32>
    %275 = arith.mulf %271, %274 : vector<8x128xf32>
    %276 = arith.truncf %275 : vector<8x128xf32> to vector<8x128xbf16>
    %277 = tpu.concatenate %121, %127, %133, %139, %145, %151, %157, %163, %169, %175, %181, %187, %193, %198, %204, %210 in 0 : vector<8x128xbf16>, vector<8x128xbf16>, vector<8x128xbf16>, vector<8x128xbf16>, vector<8x128xbf16>, vector<8x128xbf16>, vector<8x128xbf16>, vector<8x128xbf16>, vector<8x128xbf16>, vector<8x128xbf16>, vector<8x128xbf16>, vector<8x128xbf16>, vector<8x128xbf16>, vector<8x128xbf16>, vector<8x128xbf16>, vector<8x128xbf16> -> vector<128x128xbf16>
    %278 = tpu.concatenate %216, %222, %228, %234, %240, %246, %252, %258, %264, %270, %276 in 0 : vector<8x128xbf16>, vector<8x128xbf16>, vector<8x128xbf16>, vector<8x128xbf16>, vector<8x128xbf16>, vector<8x128xbf16>, vector<8x128xbf16>, vector<8x128xbf16>, vector<8x128xbf16>, vector<8x128xbf16>, vector<8x128xbf16> -> vector<88x128xbf16>
    %279 = tpu.concatenate %277, %278 in 0 : vector<128x128xbf16>, vector<88x128xbf16> -> vector<216x128xbf16>
    %cst_39 = arith.constant dense<0.000000e+00> : vector<8x128xf32>
    %280 = tpu.matmul %115, %279, %cst_39 {dimension_numbers = #tpu.dot_dimension_numbers<[1], [0], [0], [1], [0, 0, 1, 1], [], []>} : vector<8x216xbf16>, vector<216x128xbf16>, vector<8x128xf32> -> vector<8x128xf32>
    %281 = vector.broadcast %6 : vector<8x1xf32> to vector<8x128xf32>
    %282 = arith.addf %280, %281 : vector<8x128xf32>
    %283 = vector.extract_strided_slice %282 {offsets = [0, 0], sizes = [2, 128], strides = [1, 1]} : vector<8x128xf32> to vector<2x128xf32>
    %cst_40 = arith.constant dense<0.000000e+00> : vector<2xf32>
    %284 = vector.multi_reduction <add>, %283, %cst_40 [1] : vector<2x128xf32> to vector<2xf32>
    %285 = vector.shape_cast %284 : vector<2xf32> to vector<2x1xf32>
    %cst_41 = arith.constant dense<0.000000e+00> : vector<1xf32>
    %286 = vector.multi_reduction <add>, %285, %cst_41 [0] : vector<2x1xf32> to vector<1xf32>
    %287 = vector.shape_cast %286 : vector<1xf32> to vector<1x1xf32>
    %cst_42 = arith.constant 3.906250e-03 : f32
    %288 = vector.broadcast %cst_42 : f32 to vector<1x1xf32>
    %289 = arith.mulf %287, %288 : vector<1x1xf32>
    %290 = arith.mulf %283, %283 : vector<2x128xf32>
    %cst_43 = arith.constant dense<0.000000e+00> : vector<2xf32>
    %291 = vector.multi_reduction <add>, %290, %cst_43 [1] : vector<2x128xf32> to vector<2xf32>
    %292 = vector.shape_cast %291 : vector<2xf32> to vector<2x1xf32>
    %cst_44 = arith.constant dense<0.000000e+00> : vector<1xf32>
    %293 = vector.multi_reduction <add>, %292, %cst_44 [0] : vector<2x1xf32> to vector<1xf32>
    %294 = vector.shape_cast %293 : vector<1xf32> to vector<1x1xf32>
    %cst_45 = arith.constant 3.906250e-03 : f32
    %295 = vector.broadcast %cst_45 : f32 to vector<1x1xf32>
    %296 = arith.mulf %294, %295 : vector<1x1xf32>
    %297 = arith.mulf %289, %289 : vector<1x1xf32>
    %298 = arith.subf %296, %297 : vector<1x1xf32>
    %299 = vector.broadcast %289 : vector<1x1xf32> to vector<2x128xf32>
    %300 = arith.subf %283, %299 : vector<2x128xf32>
    %cst_46 = arith.constant 9.99999974E-6 : f32
    %301 = vector.broadcast %cst_46 : f32 to vector<1x1xf32>
    %302 = arith.addf %298, %301 : vector<1x1xf32>
    %303 = math.rsqrt %302 : vector<1x1xf32>
    %304 = vector.broadcast %303 : vector<1x1xf32> to vector<2x128xf32>
    %305 = arith.mulf %300, %304 : vector<2x128xf32>
    %306 = vector.extract_strided_slice %282 {offsets = [2, 0], sizes = [2, 128], strides = [1, 1]} : vector<8x128xf32> to vector<2x128xf32>
    %cst_47 = arith.constant dense<0.000000e+00> : vector<2xf32>
    %307 = vector.multi_reduction <add>, %306, %cst_47 [1] : vector<2x128xf32> to vector<2xf32>
    %308 = vector.shape_cast %307 : vector<2xf32> to vector<2x1xf32>
    %cst_48 = arith.constant dense<0.000000e+00> : vector<1xf32>
    %309 = vector.multi_reduction <add>, %308, %cst_48 [0] : vector<2x1xf32> to vector<1xf32>
    %310 = vector.shape_cast %309 : vector<1xf32> to vector<1x1xf32>
    %cst_49 = arith.constant 3.906250e-03 : f32
    %311 = vector.broadcast %cst_49 : f32 to vector<1x1xf32>
    %312 = arith.mulf %310, %311 : vector<1x1xf32>
    %313 = arith.mulf %306, %306 : vector<2x128xf32>
    %cst_50 = arith.constant dense<0.000000e+00> : vector<2xf32>
    %314 = vector.multi_reduction <add>, %313, %cst_50 [1] : vector<2x128xf32> to vector<2xf32>
    %315 = vector.shape_cast %314 : vector<2xf32> to vector<2x1xf32>
    %cst_51 = arith.constant dense<0.000000e+00> : vector<1xf32>
    %316 = vector.multi_reduction <add>, %315, %cst_51 [0] : vector<2x1xf32> to vector<1xf32>
    %317 = vector.shape_cast %316 : vector<1xf32> to vector<1x1xf32>
    %cst_52 = arith.constant 3.906250e-03 : f32
    %318 = vector.broadcast %cst_52 : f32 to vector<1x1xf32>
    %319 = arith.mulf %317, %318 : vector<1x1xf32>
    %320 = arith.mulf %312, %312 : vector<1x1xf32>
    %321 = arith.subf %319, %320 : vector<1x1xf32>
    %322 = vector.broadcast %312 : vector<1x1xf32> to vector<2x128xf32>
    %323 = arith.subf %306, %322 : vector<2x128xf32>
    %cst_53 = arith.constant 9.99999974E-6 : f32
    %324 = vector.broadcast %cst_53 : f32 to vector<1x1xf32>
    %325 = arith.addf %321, %324 : vector<1x1xf32>
    %326 = math.rsqrt %325 : vector<1x1xf32>
    %327 = vector.broadcast %326 : vector<1x1xf32> to vector<2x128xf32>
    %328 = arith.mulf %323, %327 : vector<2x128xf32>
    %329 = vector.extract_strided_slice %282 {offsets = [4, 0], sizes = [2, 128], strides = [1, 1]} : vector<8x128xf32> to vector<2x128xf32>
    %cst_54 = arith.constant dense<0.000000e+00> : vector<2xf32>
    %330 = vector.multi_reduction <add>, %329, %cst_54 [1] : vector<2x128xf32> to vector<2xf32>
    %331 = vector.shape_cast %330 : vector<2xf32> to vector<2x1xf32>
    %cst_55 = arith.constant dense<0.000000e+00> : vector<1xf32>
    %332 = vector.multi_reduction <add>, %331, %cst_55 [0] : vector<2x1xf32> to vector<1xf32>
    %333 = vector.shape_cast %332 : vector<1xf32> to vector<1x1xf32>
    %cst_56 = arith.constant 3.906250e-03 : f32
    %334 = vector.broadcast %cst_56 : f32 to vector<1x1xf32>
    %335 = arith.mulf %333, %334 : vector<1x1xf32>
    %336 = arith.mulf %329, %329 : vector<2x128xf32>
    %cst_57 = arith.constant dense<0.000000e+00> : vector<2xf32>
    %337 = vector.multi_reduction <add>, %336, %cst_57 [1] : vector<2x128xf32> to vector<2xf32>
    %338 = vector.shape_cast %337 : vector<2xf32> to vector<2x1xf32>
    %cst_58 = arith.constant dense<0.000000e+00> : vector<1xf32>
    %339 = vector.multi_reduction <add>, %338, %cst_58 [0] : vector<2x1xf32> to vector<1xf32>
    %340 = vector.shape_cast %339 : vector<1xf32> to vector<1x1xf32>
    %cst_59 = arith.constant 3.906250e-03 : f32
    %341 = vector.broadcast %cst_59 : f32 to vector<1x1xf32>
    %342 = arith.mulf %340, %341 : vector<1x1xf32>
    %343 = arith.mulf %335, %335 : vector<1x1xf32>
    %344 = arith.subf %342, %343 : vector<1x1xf32>
    %345 = vector.broadcast %335 : vector<1x1xf32> to vector<2x128xf32>
    %346 = arith.subf %329, %345 : vector<2x128xf32>
    %cst_60 = arith.constant 9.99999974E-6 : f32
    %347 = vector.broadcast %cst_60 : f32 to vector<1x1xf32>
    %348 = arith.addf %344, %347 : vector<1x1xf32>
    %349 = math.rsqrt %348 : vector<1x1xf32>
    %350 = vector.broadcast %349 : vector<1x1xf32> to vector<2x128xf32>
    %351 = arith.mulf %346, %350 : vector<2x128xf32>
    %352 = vector.extract_strided_slice %282 {offsets = [6, 0], sizes = [2, 128], strides = [1, 1]} : vector<8x128xf32> to vector<2x128xf32>
    %cst_61 = arith.constant dense<0.000000e+00> : vector<2xf32>
    %353 = vector.multi_reduction <add>, %352, %cst_61 [1] : vector<2x128xf32> to vector<2xf32>
    %354 = vector.shape_cast %353 : vector<2xf32> to vector<2x1xf32>
    %cst_62 = arith.constant dense<0.000000e+00> : vector<1xf32>
    %355 = vector.multi_reduction <add>, %354, %cst_62 [0] : vector<2x1xf32> to vector<1xf32>
    %356 = vector.shape_cast %355 : vector<1xf32> to vector<1x1xf32>
    %cst_63 = arith.constant 3.906250e-03 : f32
    %357 = vector.broadcast %cst_63 : f32 to vector<1x1xf32>
    %358 = arith.mulf %356, %357 : vector<1x1xf32>
    %359 = arith.mulf %352, %352 : vector<2x128xf32>
    %cst_64 = arith.constant dense<0.000000e+00> : vector<2xf32>
    %360 = vector.multi_reduction <add>, %359, %cst_64 [1] : vector<2x128xf32> to vector<2xf32>
    %361 = vector.shape_cast %360 : vector<2xf32> to vector<2x1xf32>
    %cst_65 = arith.constant dense<0.000000e+00> : vector<1xf32>
    %362 = vector.multi_reduction <add>, %361, %cst_65 [0] : vector<2x1xf32> to vector<1xf32>
    %363 = vector.shape_cast %362 : vector<1xf32> to vector<1x1xf32>
    %cst_66 = arith.constant 3.906250e-03 : f32
    %364 = vector.broadcast %cst_66 : f32 to vector<1x1xf32>
    %365 = arith.mulf %363, %364 : vector<1x1xf32>
    %366 = arith.mulf %358, %358 : vector<1x1xf32>
    %367 = arith.subf %365, %366 : vector<1x1xf32>
    %368 = vector.broadcast %358 : vector<1x1xf32> to vector<2x128xf32>
    %369 = arith.subf %352, %368 : vector<2x128xf32>
    %cst_67 = arith.constant 9.99999974E-6 : f32
    %370 = vector.broadcast %cst_67 : f32 to vector<1x1xf32>
    %371 = arith.addf %367, %370 : vector<1x1xf32>
    %372 = math.rsqrt %371 : vector<1x1xf32>
    %373 = vector.broadcast %372 : vector<1x1xf32> to vector<2x128xf32>
    %374 = arith.mulf %369, %373 : vector<2x128xf32>
    %375 = tpu.concatenate %305, %328, %351, %374 in 0 : vector<2x128xf32>, vector<2x128xf32>, vector<2x128xf32>, vector<2x128xf32> -> vector<8x128xf32>
    %376 = vector.broadcast %7 : vector<8x1xf32> to vector<8x128xf32>
    %377 = arith.mulf %375, %376 : vector<8x128xf32>
    %378 = vector.broadcast %8 : vector<8x1xf32> to vector<8x128xf32>
    %379 = arith.addf %377, %378 : vector<8x128xf32>
    %cst_68 = arith.constant 0.000000e+00 : f32
    %380 = vector.broadcast %cst_68 : f32 to vector<8x128xf32>
    %381 = arith.subf %380, %379 : vector<8x128xf32>
    %382 = math.exp %381 : vector<8x128xf32>
    %cst_69 = arith.constant 1.000000e+00 : f32
    %383 = vector.broadcast %cst_69 : f32 to vector<8x128xf32>
    %384 = arith.addf %383, %382 : vector<8x128xf32>
    %cst_70 = arith.constant 1.000000e+00 : f32
    %385 = vector.broadcast %cst_70 : f32 to vector<8x128xf32>
    %386 = arith.divf %385, %384 : vector<8x128xf32>
    %387 = arith.mulf %379, %386 : vector<8x128xf32>
    %c0_71 = arith.constant 0 : index
    %c0_72 = arith.constant 0 : index
    %388 = vector.load %arg5[%c0_71, %c0_72] : memref<8x216xbf16, #tpu.memory_space<vmem>>, vector<8x216xbf16>
    %c41_i32_73 = arith.constant 41 : i32
    %389 = tpu.dynamic_rotate %387 by %c41_i32_73 dim 1 : vector<8x128xf32>, i32 -> vector<8x128xf32>
    %390 = vector.extract_strided_slice %2 {offsets = [0, 0, 0], sizes = [1, 1, 128], strides = [1, 1, 1]} : vector<27x1x128xf32> to vector<1x1x128xf32>
    %391 = vector.shape_cast %390 : vector<1x1x128xf32> to vector<1x128xf32>
    %392 = vector.broadcast %391 : vector<1x128xf32> to vector<8x128xf32>
    %393 = arith.mulf %389, %392 : vector<8x128xf32>
    %394 = arith.truncf %393 : vector<8x128xf32> to vector<8x128xbf16>
    %c40_i32_74 = arith.constant 40 : i32
    %395 = tpu.dynamic_rotate %387 by %c40_i32_74 dim 1 : vector<8x128xf32>, i32 -> vector<8x128xf32>
    %396 = vector.extract_strided_slice %2 {offsets = [1, 0, 0], sizes = [1, 1, 128], strides = [1, 1, 1]} : vector<27x1x128xf32> to vector<1x1x128xf32>
    %397 = vector.shape_cast %396 : vector<1x1x128xf32> to vector<1x128xf32>
    %398 = vector.broadcast %397 : vector<1x128xf32> to vector<8x128xf32>
    %399 = arith.mulf %395, %398 : vector<8x128xf32>
    %400 = arith.truncf %399 : vector<8x128xf32> to vector<8x128xbf16>
    %c39_i32_75 = arith.constant 39 : i32
    %401 = tpu.dynamic_rotate %387 by %c39_i32_75 dim 1 : vector<8x128xf32>, i32 -> vector<8x128xf32>
    %402 = vector.extract_strided_slice %2 {offsets = [2, 0, 0], sizes = [1, 1, 128], strides = [1, 1, 1]} : vector<27x1x128xf32> to vector<1x1x128xf32>
    %403 = vector.shape_cast %402 : vector<1x1x128xf32> to vector<1x128xf32>
    %404 = vector.broadcast %403 : vector<1x128xf32> to vector<8x128xf32>
    %405 = arith.mulf %401, %404 : vector<8x128xf32>
    %406 = arith.truncf %405 : vector<8x128xf32> to vector<8x128xbf16>
    %c33_i32_76 = arith.constant 33 : i32
    %407 = tpu.dynamic_rotate %387 by %c33_i32_76 dim 1 : vector<8x128xf32>, i32 -> vector<8x128xf32>
    %408 = vector.extract_strided_slice %2 {offsets = [3, 0, 0], sizes = [1, 1, 128], strides = [1, 1, 1]} : vector<27x1x128xf32> to vector<1x1x128xf32>
    %409 = vector.shape_cast %408 : vector<1x1x128xf32> to vector<1x128xf32>
    %410 = vector.broadcast %409 : vector<1x128xf32> to vector<8x128xf32>
    %411 = arith.mulf %407, %410 : vector<8x128xf32>
    %412 = arith.truncf %411 : vector<8x128xf32> to vector<8x128xbf16>
    %c32_i32_77 = arith.constant 32 : i32
    %413 = tpu.dynamic_rotate %387 by %c32_i32_77 dim 1 : vector<8x128xf32>, i32 -> vector<8x128xf32>
    %414 = vector.extract_strided_slice %2 {offsets = [4, 0, 0], sizes = [1, 1, 128], strides = [1, 1, 1]} : vector<27x1x128xf32> to vector<1x1x128xf32>
    %415 = vector.shape_cast %414 : vector<1x1x128xf32> to vector<1x128xf32>
    %416 = vector.broadcast %415 : vector<1x128xf32> to vector<8x128xf32>
    %417 = arith.mulf %413, %416 : vector<8x128xf32>
    %418 = arith.truncf %417 : vector<8x128xf32> to vector<8x128xbf16>
    %c31_i32_78 = arith.constant 31 : i32
    %419 = tpu.dynamic_rotate %387 by %c31_i32_78 dim 1 : vector<8x128xf32>, i32 -> vector<8x128xf32>
    %420 = vector.extract_strided_slice %2 {offsets = [5, 0, 0], sizes = [1, 1, 128], strides = [1, 1, 1]} : vector<27x1x128xf32> to vector<1x1x128xf32>
    %421 = vector.shape_cast %420 : vector<1x1x128xf32> to vector<1x128xf32>
    %422 = vector.broadcast %421 : vector<1x128xf32> to vector<8x128xf32>
    %423 = arith.mulf %419, %422 : vector<8x128xf32>
    %424 = arith.truncf %423 : vector<8x128xf32> to vector<8x128xbf16>
    %c25_i32_79 = arith.constant 25 : i32
    %425 = tpu.dynamic_rotate %387 by %c25_i32_79 dim 1 : vector<8x128xf32>, i32 -> vector<8x128xf32>
    %426 = vector.extract_strided_slice %2 {offsets = [6, 0, 0], sizes = [1, 1, 128], strides = [1, 1, 1]} : vector<27x1x128xf32> to vector<1x1x128xf32>
    %427 = vector.shape_cast %426 : vector<1x1x128xf32> to vector<1x128xf32>
    %428 = vector.broadcast %427 : vector<1x128xf32> to vector<8x128xf32>
    %429 = arith.mulf %425, %428 : vector<8x128xf32>
    %430 = arith.truncf %429 : vector<8x128xf32> to vector<8x128xbf16>
    %c24_i32_80 = arith.constant 24 : i32
    %431 = tpu.dynamic_rotate %387 by %c24_i32_80 dim 1 : vector<8x128xf32>, i32 -> vector<8x128xf32>
    %432 = vector.extract_strided_slice %2 {offsets = [7, 0, 0], sizes = [1, 1, 128], strides = [1, 1, 1]} : vector<27x1x128xf32> to vector<1x1x128xf32>
    %433 = vector.shape_cast %432 : vector<1x1x128xf32> to vector<1x128xf32>
    %434 = vector.broadcast %433 : vector<1x128xf32> to vector<8x128xf32>
    %435 = arith.mulf %431, %434 : vector<8x128xf32>
    %436 = arith.truncf %435 : vector<8x128xf32> to vector<8x128xbf16>
    %c23_i32_81 = arith.constant 23 : i32
    %437 = tpu.dynamic_rotate %387 by %c23_i32_81 dim 1 : vector<8x128xf32>, i32 -> vector<8x128xf32>
    %438 = vector.extract_strided_slice %2 {offsets = [8, 0, 0], sizes = [1, 1, 128], strides = [1, 1, 1]} : vector<27x1x128xf32> to vector<1x1x128xf32>
    %439 = vector.shape_cast %438 : vector<1x1x128xf32> to vector<1x128xf32>
    %440 = vector.broadcast %439 : vector<1x128xf32> to vector<8x128xf32>
    %441 = arith.mulf %437, %440 : vector<8x128xf32>
    %442 = arith.truncf %441 : vector<8x128xf32> to vector<8x128xbf16>
    %c9_i32_82 = arith.constant 9 : i32
    %443 = tpu.dynamic_rotate %387 by %c9_i32_82 dim 1 : vector<8x128xf32>, i32 -> vector<8x128xf32>
    %444 = vector.extract_strided_slice %2 {offsets = [9, 0, 0], sizes = [1, 1, 128], strides = [1, 1, 1]} : vector<27x1x128xf32> to vector<1x1x128xf32>
    %445 = vector.shape_cast %444 : vector<1x1x128xf32> to vector<1x128xf32>
    %446 = vector.broadcast %445 : vector<1x128xf32> to vector<8x128xf32>
    %447 = arith.mulf %443, %446 : vector<8x128xf32>
    %448 = arith.truncf %447 : vector<8x128xf32> to vector<8x128xbf16>
    %c8_i32_83 = arith.constant 8 : i32
    %449 = tpu.dynamic_rotate %387 by %c8_i32_83 dim 1 : vector<8x128xf32>, i32 -> vector<8x128xf32>
    %450 = vector.extract_strided_slice %2 {offsets = [10, 0, 0], sizes = [1, 1, 128], strides = [1, 1, 1]} : vector<27x1x128xf32> to vector<1x1x128xf32>
    %451 = vector.shape_cast %450 : vector<1x1x128xf32> to vector<1x128xf32>
    %452 = vector.broadcast %451 : vector<1x128xf32> to vector<8x128xf32>
    %453 = arith.mulf %449, %452 : vector<8x128xf32>
    %454 = arith.truncf %453 : vector<8x128xf32> to vector<8x128xbf16>
    %c7_i32_84 = arith.constant 7 : i32
    %455 = tpu.dynamic_rotate %387 by %c7_i32_84 dim 1 : vector<8x128xf32>, i32 -> vector<8x128xf32>
    %456 = vector.extract_strided_slice %2 {offsets = [11, 0, 0], sizes = [1, 1, 128], strides = [1, 1, 1]} : vector<27x1x128xf32> to vector<1x1x128xf32>
    %457 = vector.shape_cast %456 : vector<1x1x128xf32> to vector<1x128xf32>
    %458 = vector.broadcast %457 : vector<1x128xf32> to vector<8x128xf32>
    %459 = arith.mulf %455, %458 : vector<8x128xf32>
    %460 = arith.truncf %459 : vector<8x128xf32> to vector<8x128xbf16>
    %c1_i32_85 = arith.constant 1 : i32
    %461 = tpu.dynamic_rotate %387 by %c1_i32_85 dim 1 : vector<8x128xf32>, i32 -> vector<8x128xf32>
    %462 = vector.extract_strided_slice %2 {offsets = [12, 0, 0], sizes = [1, 1, 128], strides = [1, 1, 1]} : vector<27x1x128xf32> to vector<1x1x128xf32>
    %463 = vector.shape_cast %462 : vector<1x1x128xf32> to vector<1x128xf32>
    %464 = vector.broadcast %463 : vector<1x128xf32> to vector<8x128xf32>
    %465 = arith.mulf %461, %464 : vector<8x128xf32>
    %466 = arith.truncf %465 : vector<8x128xf32> to vector<8x128xbf16>
    %467 = vector.extract_strided_slice %2 {offsets = [13, 0, 0], sizes = [1, 1, 128], strides = [1, 1, 1]} : vector<27x1x128xf32> to vector<1x1x128xf32>
    %468 = vector.shape_cast %467 : vector<1x1x128xf32> to vector<1x128xf32>
    %469 = vector.broadcast %468 : vector<1x128xf32> to vector<8x128xf32>
    %470 = arith.mulf %387, %469 : vector<8x128xf32>
    %471 = arith.truncf %470 : vector<8x128xf32> to vector<8x128xbf16>
    %c127_i32_86 = arith.constant 127 : i32
    %472 = tpu.dynamic_rotate %387 by %c127_i32_86 dim 1 : vector<8x128xf32>, i32 -> vector<8x128xf32>
    %473 = vector.extract_strided_slice %2 {offsets = [14, 0, 0], sizes = [1, 1, 128], strides = [1, 1, 1]} : vector<27x1x128xf32> to vector<1x1x128xf32>
    %474 = vector.shape_cast %473 : vector<1x1x128xf32> to vector<1x128xf32>
    %475 = vector.broadcast %474 : vector<1x128xf32> to vector<8x128xf32>
    %476 = arith.mulf %472, %475 : vector<8x128xf32>
    %477 = arith.truncf %476 : vector<8x128xf32> to vector<8x128xbf16>
    %c121_i32_87 = arith.constant 121 : i32
    %478 = tpu.dynamic_rotate %387 by %c121_i32_87 dim 1 : vector<8x128xf32>, i32 -> vector<8x128xf32>
    %479 = vector.extract_strided_slice %2 {offsets = [15, 0, 0], sizes = [1, 1, 128], strides = [1, 1, 1]} : vector<27x1x128xf32> to vector<1x1x128xf32>
    %480 = vector.shape_cast %479 : vector<1x1x128xf32> to vector<1x128xf32>
    %481 = vector.broadcast %480 : vector<1x128xf32> to vector<8x128xf32>
    %482 = arith.mulf %478, %481 : vector<8x128xf32>
    %483 = arith.truncf %482 : vector<8x128xf32> to vector<8x128xbf16>
    %c120_i32_88 = arith.constant 120 : i32
    %484 = tpu.dynamic_rotate %387 by %c120_i32_88 dim 1 : vector<8x128xf32>, i32 -> vector<8x128xf32>
    %485 = vector.extract_strided_slice %2 {offsets = [16, 0, 0], sizes = [1, 1, 128], strides = [1, 1, 1]} : vector<27x1x128xf32> to vector<1x1x128xf32>
    %486 = vector.shape_cast %485 : vector<1x1x128xf32> to vector<1x128xf32>
    %487 = vector.broadcast %486 : vector<1x128xf32> to vector<8x128xf32>
    %488 = arith.mulf %484, %487 : vector<8x128xf32>
    %489 = arith.truncf %488 : vector<8x128xf32> to vector<8x128xbf16>
    %c119_i32_89 = arith.constant 119 : i32
    %490 = tpu.dynamic_rotate %387 by %c119_i32_89 dim 1 : vector<8x128xf32>, i32 -> vector<8x128xf32>
    %491 = vector.extract_strided_slice %2 {offsets = [17, 0, 0], sizes = [1, 1, 128], strides = [1, 1, 1]} : vector<27x1x128xf32> to vector<1x1x128xf32>
    %492 = vector.shape_cast %491 : vector<1x1x128xf32> to vector<1x128xf32>
    %493 = vector.broadcast %492 : vector<1x128xf32> to vector<8x128xf32>
    %494 = arith.mulf %490, %493 : vector<8x128xf32>
    %495 = arith.truncf %494 : vector<8x128xf32> to vector<8x128xbf16>
    %c105_i32_90 = arith.constant 105 : i32
    %496 = tpu.dynamic_rotate %387 by %c105_i32_90 dim 1 : vector<8x128xf32>, i32 -> vector<8x128xf32>
    %497 = vector.extract_strided_slice %2 {offsets = [18, 0, 0], sizes = [1, 1, 128], strides = [1, 1, 1]} : vector<27x1x128xf32> to vector<1x1x128xf32>
    %498 = vector.shape_cast %497 : vector<1x1x128xf32> to vector<1x128xf32>
    %499 = vector.broadcast %498 : vector<1x128xf32> to vector<8x128xf32>
    %500 = arith.mulf %496, %499 : vector<8x128xf32>
    %501 = arith.truncf %500 : vector<8x128xf32> to vector<8x128xbf16>
    %c104_i32_91 = arith.constant 104 : i32
    %502 = tpu.dynamic_rotate %387 by %c104_i32_91 dim 1 : vector<8x128xf32>, i32 -> vector<8x128xf32>
    %503 = vector.extract_strided_slice %2 {offsets = [19, 0, 0], sizes = [1, 1, 128], strides = [1, 1, 1]} : vector<27x1x128xf32> to vector<1x1x128xf32>
    %504 = vector.shape_cast %503 : vector<1x1x128xf32> to vector<1x128xf32>
    %505 = vector.broadcast %504 : vector<1x128xf32> to vector<8x128xf32>
    %506 = arith.mulf %502, %505 : vector<8x128xf32>
    %507 = arith.truncf %506 : vector<8x128xf32> to vector<8x128xbf16>
    %c103_i32_92 = arith.constant 103 : i32
    %508 = tpu.dynamic_rotate %387 by %c103_i32_92 dim 1 : vector<8x128xf32>, i32 -> vector<8x128xf32>
    %509 = vector.extract_strided_slice %2 {offsets = [20, 0, 0], sizes = [1, 1, 128], strides = [1, 1, 1]} : vector<27x1x128xf32> to vector<1x1x128xf32>
    %510 = vector.shape_cast %509 : vector<1x1x128xf32> to vector<1x128xf32>
    %511 = vector.broadcast %510 : vector<1x128xf32> to vector<8x128xf32>
    %512 = arith.mulf %508, %511 : vector<8x128xf32>
    %513 = arith.truncf %512 : vector<8x128xf32> to vector<8x128xbf16>
    %c97_i32_93 = arith.constant 97 : i32
    %514 = tpu.dynamic_rotate %387 by %c97_i32_93 dim 1 : vector<8x128xf32>, i32 -> vector<8x128xf32>
    %515 = vector.extract_strided_slice %2 {offsets = [21, 0, 0], sizes = [1, 1, 128], strides = [1, 1, 1]} : vector<27x1x128xf32> to vector<1x1x128xf32>
    %516 = vector.shape_cast %515 : vector<1x1x128xf32> to vector<1x128xf32>
    %517 = vector.broadcast %516 : vector<1x128xf32> to vector<8x128xf32>
    %518 = arith.mulf %514, %517 : vector<8x128xf32>
    %519 = arith.truncf %518 : vector<8x128xf32> to vector<8x128xbf16>
    %c96_i32_94 = arith.constant 96 : i32
    %520 = tpu.dynamic_rotate %387 by %c96_i32_94 dim 1 : vector<8x128xf32>, i32 -> vector<8x128xf32>
    %521 = vector.extract_strided_slice %2 {offsets = [22, 0, 0], sizes = [1, 1, 128], strides = [1, 1, 1]} : vector<27x1x128xf32> to vector<1x1x128xf32>
    %522 = vector.shape_cast %521 : vector<1x1x128xf32> to vector<1x128xf32>
    %523 = vector.broadcast %522 : vector<1x128xf32> to vector<8x128xf32>
    %524 = arith.mulf %520, %523 : vector<8x128xf32>
    %525 = arith.truncf %524 : vector<8x128xf32> to vector<8x128xbf16>
    %c95_i32_95 = arith.constant 95 : i32
    %526 = tpu.dynamic_rotate %387 by %c95_i32_95 dim 1 : vector<8x128xf32>, i32 -> vector<8x128xf32>
    %527 = vector.extract_strided_slice %2 {offsets = [23, 0, 0], sizes = [1, 1, 128], strides = [1, 1, 1]} : vector<27x1x128xf32> to vector<1x1x128xf32>
    %528 = vector.shape_cast %527 : vector<1x1x128xf32> to vector<1x128xf32>
    %529 = vector.broadcast %528 : vector<1x128xf32> to vector<8x128xf32>
    %530 = arith.mulf %526, %529 : vector<8x128xf32>
    %531 = arith.truncf %530 : vector<8x128xf32> to vector<8x128xbf16>
    %c89_i32_96 = arith.constant 89 : i32
    %532 = tpu.dynamic_rotate %387 by %c89_i32_96 dim 1 : vector<8x128xf32>, i32 -> vector<8x128xf32>
    %533 = vector.extract_strided_slice %2 {offsets = [24, 0, 0], sizes = [1, 1, 128], strides = [1, 1, 1]} : vector<27x1x128xf32> to vector<1x1x128xf32>
    %534 = vector.shape_cast %533 : vector<1x1x128xf32> to vector<1x128xf32>
    %535 = vector.broadcast %534 : vector<1x128xf32> to vector<8x128xf32>
    %536 = arith.mulf %532, %535 : vector<8x128xf32>
    %537 = arith.truncf %536 : vector<8x128xf32> to vector<8x128xbf16>
    %c88_i32_97 = arith.constant 88 : i32
    %538 = tpu.dynamic_rotate %387 by %c88_i32_97 dim 1 : vector<8x128xf32>, i32 -> vector<8x128xf32>
    %539 = vector.extract_strided_slice %2 {offsets = [25, 0, 0], sizes = [1, 1, 128], strides = [1, 1, 1]} : vector<27x1x128xf32> to vector<1x1x128xf32>
    %540 = vector.shape_cast %539 : vector<1x1x128xf32> to vector<1x128xf32>
    %541 = vector.broadcast %540 : vector<1x128xf32> to vector<8x128xf32>
    %542 = arith.mulf %538, %541 : vector<8x128xf32>
    %543 = arith.truncf %542 : vector<8x128xf32> to vector<8x128xbf16>
    %c87_i32_98 = arith.constant 87 : i32
    %544 = tpu.dynamic_rotate %387 by %c87_i32_98 dim 1 : vector<8x128xf32>, i32 -> vector<8x128xf32>
    %545 = vector.extract_strided_slice %2 {offsets = [26, 0, 0], sizes = [1, 1, 128], strides = [1, 1, 1]} : vector<27x1x128xf32> to vector<1x1x128xf32>
    %546 = vector.shape_cast %545 : vector<1x1x128xf32> to vector<1x128xf32>
    %547 = vector.broadcast %546 : vector<1x128xf32> to vector<8x128xf32>
    %548 = arith.mulf %544, %547 : vector<8x128xf32>
    %549 = arith.truncf %548 : vector<8x128xf32> to vector<8x128xbf16>
    %550 = tpu.concatenate %394, %400, %406, %412, %418, %424, %430, %436, %442, %448, %454, %460, %466, %471, %477, %483 in 0 : vector<8x128xbf16>, vector<8x128xbf16>, vector<8x128xbf16>, vector<8x128xbf16>, vector<8x128xbf16>, vector<8x128xbf16>, vector<8x128xbf16>, vector<8x128xbf16>, vector<8x128xbf16>, vector<8x128xbf16>, vector<8x128xbf16>, vector<8x128xbf16>, vector<8x128xbf16>, vector<8x128xbf16>, vector<8x128xbf16>, vector<8x128xbf16> -> vector<128x128xbf16>
    %551 = tpu.concatenate %489, %495, %501, %507, %513, %519, %525, %531, %537, %543, %549 in 0 : vector<8x128xbf16>, vector<8x128xbf16>, vector<8x128xbf16>, vector<8x128xbf16>, vector<8x128xbf16>, vector<8x128xbf16>, vector<8x128xbf16>, vector<8x128xbf16>, vector<8x128xbf16>, vector<8x128xbf16>, vector<8x128xbf16> -> vector<88x128xbf16>
    %552 = tpu.concatenate %550, %551 in 0 : vector<128x128xbf16>, vector<88x128xbf16> -> vector<216x128xbf16>
    %cst_99 = arith.constant dense<0.000000e+00> : vector<8x128xf32>
    %553 = tpu.matmul %388, %552, %cst_99 {dimension_numbers = #tpu.dot_dimension_numbers<[1], [0], [0], [1], [0, 0, 1, 1], [], []>} : vector<8x216xbf16>, vector<216x128xbf16>, vector<8x128xf32> -> vector<8x128xf32>
    %554 = vector.broadcast %9 : vector<8x1xf32> to vector<8x128xf32>
    %555 = arith.addf %553, %554 : vector<8x128xf32>
    %556 = arith.addf %555, %1 : vector<8x128xf32>
    %c0_100 = arith.constant 0 : index
    %c0_101 = arith.constant 0 : index
    %c0_102 = arith.constant 0 : index
    %557 = vector.load %arg6[%c0_100, %c0_101, %c0_102] : memref<1x8x128xf32, #tpu.memory_space<vmem>>, vector<1x8x128xf32>
    %558 = vector.shape_cast %557 : vector<1x8x128xf32> to vector<8x128xf32>
    %559 = vector.shape_cast %556 : vector<8x128xf32> to vector<1x8x128xf32>
    tpu.vector_store %arg6[%c0_100, %c0_101, %c0_102], %559 {strides = array<i32>} : memref<1x8x128xf32, #tpu.memory_space<vmem>>, vector<1x8x128xf32>,
    return
  }
  func.func @transform_0(%arg0: i32) -> (i32, i32, i32) {
    %c0_i32 = arith.constant 0 : i32
    %c0_i32_0 = arith.constant 0 : i32
    %c0_i32_1 = arith.constant 0 : i32
    return %arg0, %c0_i32, %c0_i32_0 : i32, i32, i32
  }
  func.func @transform_1(%arg0: i32) -> (i32, i32, i32) {
    %c0_i32 = arith.constant 0 : i32
    %c0_i32_0 = arith.constant 0 : i32
    %c0_i32_1 = arith.constant 0 : i32
    %c0_i32_2 = arith.constant 0 : i32
    return %c0_i32, %c0_i32_0, %c0_i32_1 : i32, i32, i32
  }
  func.func @transform_2(%arg0: i32) -> (i32, i32) {
    %c0_i32 = arith.constant 0 : i32
    %c0_i32_0 = arith.constant 0 : i32
    %c0_i32_1 = arith.constant 0 : i32
    return %c0_i32, %c0_i32_0 : i32, i32
  }
  func.func @transform_3(%arg0: i32) -> (i32, i32) {
    %c0_i32 = arith.constant 0 : i32
    %c0_i32_0 = arith.constant 0 : i32
    %c0_i32_1 = arith.constant 0 : i32
    return %c0_i32, %c0_i32_0 : i32, i32
  }
  func.func @transform_4(%arg0: i32) -> (i32, i32) {
    %c0_i32 = arith.constant 0 : i32
    %c0_i32_0 = arith.constant 0 : i32
    %c0_i32_1 = arith.constant 0 : i32
    return %c0_i32, %c0_i32_0 : i32, i32
  }
  func.func @transform_5(%arg0: i32) -> (i32, i32, i32) {
    %c0_i32 = arith.constant 0 : i32
    %c0_i32_0 = arith.constant 0 : i32
    %c0_i32_1 = arith.constant 0 : i32
    return %arg0, %c0_i32, %c0_i32_0 : i32, i32, i32
  }
}

</mosaic_0001>

<bundles_post_ra>
// kernel: tpu_custom_call.1
= control target key start
LH: loop header
LB: loop body
LE: loop exit
PB: predicated region body
PF: predicated region fallthrough
CT: control target
= control target key end

     0   :  { %10 = vsyncpa [#allocation3], 0  ;;  %s2415_s0 = inlined_call_operand.hbm [shape: f32[2,8,128], index: 0, kind: input, shape index: {}]   ;;  %s2416_s1 = inlined_call_operand.hbm [shape: f32[27,1,128], index: 1, kind: input, shape index: {}]   ;;  %s2417_s2 = inlined_call_operand.hbm [shape: f32[8,6], index: 2, kind: input, shape index: {}]   ;;  %s2418_s3 = inlined_call_operand.hbm [shape: bf16[8,216], index: 3, kind: input, shape index: {}]   ;;  %s2419_s4 = inlined_call_operand.hbm [shape: bf16[8,216], index: 4, kind: input, shape index: {}]   ;;  %s2420_s5 = inlined_call_operand.hbm [shape: f32[2,8,128], index: 5, kind: output, shape index: {}]  }
   0x1   :  { %12 = vsyncpa [#allocation3 + $0x1], 0 }
   0x2   :  { %13 = vsyncpa [#allocation6], 0 }
   0x3   :  { %14 = vsyncpa [#allocation9], 0 }
   0x4   :  { %15 = vsyncpa [#allocation4], 0 }
   0x5   :  { %17 = vsyncpa [#allocation4 + $0x1], 0  ;;  %s1923_s18 = smov 0   ;;  %s1925_s19 = smov 0  }
   0x6   :  { %s1927_s20 = smov 0   ;;  %s1929_s21 = smov 0  }
   0x7 LB: > { %s175_s24 = sshll.u32 %s2416_s1, 4  ;;  %s1947_s25 = sadd.s32 4294967295, %s1853_s21   ;;  %s1853_s21 = sphi %s1929_s21, %s2474_s21   ;;  %s1849_s20 = sphi %s1927_s20, %s2473_s20   ;;  %s1845_s19 = sphi %s1925_s19, %s2472_s19   ;;  %s1841_s18 = sphi %s1923_s18, %s2471_s18   ;;  %s176_s24 = int_to_ptr.hbm [resolvable:$true] %s175_s24 }
   0x8   : > { %p1428_p0 = scmp.ge.s32.totalorder %s1853_s21, 1  ;;  %p44_p1 = scmp.eq.s32.totalorder %s1947_s25, 0 }
   0x9   : > { %p164_p2 = scmp.lt.s32.totalorder %s1853_s21, 3  ;;  %s1855_s27 = smov [#allocation5]  }
   0xa   : > { %s177_s28 = sshll.u32 %s1855_s27, 4  ;;  %s202_s6 = sshll.u32 %s2418_s3, 4  ;;  %s178_s28 = int_to_ptr.vmem [resolvable:$true] %s177_s28  ;;  %s203_s6 = int_to_ptr.hbm [resolvable:$true] %s202_s6 }
   0xb   : > { %p1952_p3 = pnand %p1428_p0, %p164_p2  ;;  %s190_s10 = sshll.u32 %s2417_s2, 4  ;;  %s191_s10 = int_to_ptr.hbm [resolvable:$true] %s190_s10 }
   0xc   : > { %s1856_s11 = smov [#allocation8]   ;;  %s1857_s13 = smov 16  }
   0xd   : > { %p1469_p4 = pneg %p1952_p3  ;;  %s204_s12 = sshll.u32 %s1856_s11, 4  ;;  %s205_s12 = int_to_ptr.vmem [resolvable:$true] %s204_s12 }
   0xe   : > { %s1858_s14 = smov 1   ;;  %s214_s17 = sshll.u32 %s2419_s4, 4  ;;  %s215_s17 = int_to_ptr.hbm [resolvable:$true] %s214_s17 }
   0xf   : > { %p1964_p6 = pnand %p1469_p4, %p44_p1  ;;  %s1859_s22 = smov [#allocation7]  }
  0x10   : > { %s192_s23 = sshll.u32 %s1859_s22, 4  ;;  %s1984_s29 = sadd.s32 1, %s1853_s21   ;;  %s193_s23 = int_to_ptr.vmem [resolvable:$true] %s192_s23 }
  0x11   : > { %1472 = dma.hbm_to_vmem [thread:$0]  (!%p1964_p6), %s176_s24, 432, %s178_s28, [#allocation6], %s1857_s13, %s1857_s13, %s1858_s14  }
  0x12   : > { %1478 = dma.hbm_to_vmem [thread:$0]  (!%p1964_p6), %s203_s6, 128, %s205_s12, [#allocation9]  }
  0x13   : > { %1475 = dma.hbm_to_vmem [thread:$0]  (!%p1964_p6), %s191_s10, 128, %s193_s23, [#allocation6]  }
  0x14   : > { %s1860_s24 = smov [#allocation10]   ;;  %s1427_s28 = sadd.s32 4294967294, %s1853_s21  }
  0x15   : > { %s216_s27 = sshll.u32 %s1860_s24, 4  ;;  %s27_s30 = ssub.s32 %s1853_s21, %s1984_s29  ;;  %s217_s27 = int_to_ptr.vmem [resolvable:$true] %s216_s27 }
  0x16   : > { %1481 = dma.hbm_to_vmem [thread:$0]  (!%p1964_p6), %s215_s17, 128, %s217_s27, [#allocation9]  }
  0x17   : > { %s30_s6 = sadd.s32 1, %s1849_s20  ;;  %p28_p7 = scmp.eq.s32.totalorder %s27_s30, 0 }
  0x18   : > { %p37_p8 = scmp.ne.s32.totalorder %s1849_s20, %s1845_s19  ;;  %p38_p9 = scmp.eq.s32.totalorder %s1853_s21, 0 }
  0x19   : > { %p43_p10 = scmp.ne.s32.totalorder %s1845_s19, %s1841_s18  ;;  %p151_p13 = scmp.eq.s32.totalorder %s1947_s25, 1 }
  0x1a   : > { %s1995_s8 = scalar_select %p28_p7, %s1849_s20, %s30_s6  }
  0x1b   : > { %p1997_p11 = por %p38_p9, %p37_p8  ;;  %p2003_p12 = por %p44_p1, %p43_p10 }
  0x1c   : > { %p157_p0 = scmp.eq.s32.totalorder %s1427_s28, 1  ;;  %p1494_p2 = scmp.lt.s32.totalorder %s1853_s21, 2 }
  0x1d   : > { %s227_s10 = sand.u32 1, %s1849_s20   ;;  %p2010_p4 = por %p151_p13, %p37_p8 }
  0x1e   : > { %p2014_p6 = por %p157_p0, %p43_p10  ;;  %s1434_s13 = sshll.u32 %s227_s10, 3 }
  0x1f   : > { %s1435_s14 = sshll.u32 %s1853_s21, 3  ;;  %s231_s22 = scalar_lea.vmem [#allocation2], %s1434_s13 }
  0x20   : > { %s235_s17 = scalar_lea.hbm %s2415_s0, %s1435_s14  ;;  %s239_s23 = sshll.u32 %s231_s22, 4  ;;  %s240_s23 = int_to_ptr.vmem [resolvable:$true] %s239_s23 }
  0x21   : > { %s237_s24 = sshll.u32 %s235_s17, 4  ;;  %p2024_p7 = pnand %p1494_p2, %p1997_p11  ;;  %s238_s24 = int_to_ptr.hbm [resolvable:$true] %s237_s24 }
  0x22   : > { %s228_s28 = scalar_lea.sflag [#allocation3], %s227_s10  ;;  %s1749_s30 = sshra.s32 %s238_s24, 4  ;;  %s1750_s30 = int_to_ptr.hbm [resolvable:$true] %s1749_s30 }
  0x23   : > { %s1751_s6 = scalar_lea.hbm %s1750_s30, 8  ;;  %p1753_p9 = pneg %p2024_p7 }
  0x24   : > { %p1752_p8 = scmp.ne.s32.totalorder %s1750_s30, %s1751_s6  ;;  %s1756_s15 = scalar_lea.hbm %s2415_s0, 16 }
  0x25   : > { %p1757_p11 = scmp.lt.s32.totalorder %s1750_s30, %s2415_s0  ;;  %p1758_p0 = scmp.lt.s32.totalorder %s1756_s15, %s1751_s6 }
  0x26   : > { %p1754_p10 = pnand %p1753_p9, %p1752_p8 }
  0x27   : > { %p1759_p2 = por %p1758_p0, %p1757_p11 }
  0x28   : > { %p1755_p13 = pneg %p1754_p10 }
  0x2a   : > { %p1760_p5 = pnand %p1759_p2, %p1755_p13 }
  0x2c   : > { %1763 = shalt.err (!%p1760_p5)
}
  0x2d   : > { %1485 = dma.hbm_to_vmem [thread:$0]  (!%p2024_p7), %s238_s24, 128, %s240_s23, %s228_s28  }
  0x2e   : > { %248 = sbr.rel (%p1952_p3) target bundleno = 1135 (0x46f), region = 40  ;;  %s2041_s10 = sand.u32 (!%p1952_p3), 1, %s1845_s19  }
  0x2f   : > { %s2421_s17 = sshll.u32 (!%p1952_p3), %s2041_s10, 3  ;;  %s251_s22 = scalar_lea.sflag (!%p1952_p3), [#allocation3], %s2041_s10 }
  0x30   : > { %s2047_s30 = scalar_lea.vmem (!%p1952_p3), [#allocation2], %s2421_s17 }
  0x33   : > { %1824 = dma.done.wait (%p2003_p12), %s251_s22, 128  }
  0x34   : > { %1826 = vsyncadd (%p2003_p12), %s251_s22, 4294967168 }
  0x35   : > { %1828 = dma.done.wait (%p44_p1), [#allocation6], 560  }
  0x36   : > { %1830 = vsyncadd (%p44_p1), [#allocation6], 4294966736 }
  0x37   : > { %1832 = dma.done.wait (%p44_p1), [#allocation9], 256  }
  0x38   : > { %1834 = vsyncadd (%p44_p1), [#allocation9], 4294967040  ;;  %v1861_v0 = vmov 1   ;;  %vm371_vm0 = vcmask 1043458   ;;  %vm332_vm1 = vcmask 1041408   ;;  %vm459_vm2 = vcmask 1047558  }
  0x39   : > { %1571 = vset.pattern.permute.xlu0 %v1861_v0  ;;  %v2062_v1 = vld [vmem:[%s2047_s30] sm:$0xff]  ;;  %vm415_vm3 = vcmask 1045508   ;;  %v1862_v9 = vmov 0   ;;  %vm504_vm14 = vcmask 1043456   ;;  %s1863_s26 = smov 88   ;;  %s1864_s7 = smov 127  }
  0x3a   : > { %v372_v2 = vsel %vm371_vm0, %v2062_v1, 0.0  ;;  %v333_v3 = vsel %vm332_vm1, %v2062_v1, 0.0  ;;  %v460_v4 = vsel %vm459_vm2, %v2062_v1, 0.0  ;;  %v344_v5 = vmul.f32 %v2062_v1, %v2062_v1  ;;  %1570 = vset.pattern.permute.xlu2 %v1862_v9  ;;  %v2078_v12 = vld [vmem:[#allocation7] sm:$0xff]  ;;  %s1865_s23 = smov 121   ;;  %s2423_s24 = smov 23  }
  0x3b   : > { %373 = vadd.xlane.f32.xlu0 %v372_v2  ;;  %334 = vadd.xlane.f32.xlu1 %v333_v3  ;;  %v416_v6 = vsel %vm415_vm3, %v2062_v1, 0.0  ;;  %s1867_s27 = smov 7   ;;  %s1868_s28 = smov 1  }
  0x3c   : > { %461 = vadd.xlane.f32.xlu2 %v460_v4  ;;  %v386_v7 = vsel %vm371_vm0, %v344_v5, 0.0  ;;  %v430_v8 = vsel %vm415_vm3, %v344_v5, 0.0  ;;  %v345_v10 = vsel %vm332_vm1, %v344_v5, 0.0  ;;  %v474_v11 = vsel %vm459_vm2, %v344_v5, 0.0  ;;  %s2422_s6 = smov 31   ;;  %s1870_s13 = smov 9  }
  0x3d   : > { %s2424_s14 = smov 8   ;;  %s2425_s15 = smov 96  }
  0x3e   : > { %s2426_s16 = smov 87   ;;  %s2427_s9 = smov 24  }
  0x3f   : > { %s2428_s22 = smov 104   ;;  %s2429_s17 = smov 95  }
  0x43   : > { %417 = vadd.xlane.f32.xlu0 %v416_v6  ;;  %387 = vadd.xlane.f32.xlu1 %v386_v7 }
  0x44   : > { %431 = vadd.xlane.f32.xlu2 %v430_v8 }
  0x4b   : > { %346 = vadd.xlane.f32.xlu0 %v345_v10  ;;  %475 = vadd.xlane.f32.xlu1 %v474_v11 }
  0x5c   : > { %510 = vperm.xlu2 %1570, %v2078_v12  }
  0x5f   : > { %515 = vperm.xlu0 %1571, %v2078_v12  }
  0xae   : > { %v374_v13 = vpop.xlane.xlu0 %373  ;;  %v335_v14 = vpop.xlane.xlu1 %334 }
  0xaf   : > { %v376_v15 = vrot.slane %v374_v13, 2  ;;  %v336_v16 = vsel %vm332_vm1, %v335_v14, 0.0  ;;  %v462_v17 = vpop.xlane.xlu2 %461 }
  0xb0   : > { %v337_v18 = vrot.slane %v336_v16, 4  ;;  %v464_v19 = vrot.slane %v462_v17, 6 }
  0xb1   : > { %v378_v20 = vsel %vm332_vm1, %v376_v15, 0.0 }
  0xb2   : > { %v379_v21 = vrot.slane %v378_v20, 4  ;;  %v338_v22 = vadd.f32 %v337_v18, %v336_v16  ;;  %v466_v23 = vsel %vm332_vm1, %v464_v19, 0.0 }
  0xb3   : > { %v467_v25 = vrot.slane %v466_v23, 4 }
  0xb4   : > { %v380_v24 = vadd.f32 %v379_v21, %v378_v20  ;;  %v339_v27 = vrot.slane %v338_v22, 2 }
  0xb5   : > { %v468_v34 = vadd.f32 %v467_v25, %v466_v23 }
  0xb6   : > { %v381_v26 = vrot.slane %v380_v24, 2  ;;  %v418_v28 = vpop.xlane.xlu0 %417  ;;  %v388_v29 = vpop.xlane.xlu1 %387  ;;  %v340_v38 = vadd.f32 %v339_v27, %v338_v22 }
  0xb7   : > { %v420_v30 = vrot.slane %v418_v28, 4  ;;  %v390_v31 = vrot.slane %v388_v29, 2  ;;  %v432_v32 = vpop.xlane.xlu2 %431  ;;  %v469_v43 = vrot.slane %v468_v34, 2 }
  0xb8   : > { %v382_v33 = vadd.f32 %v381_v26, %v380_v24  ;;  %v434_v35 = vrot.slane %v432_v32, 4  ;;  %v341_v47 = vrot.slane %v340_v38, 1 }
  0xb9   : > { %v422_v36 = vsel %vm332_vm1, %v420_v30, 0.0  ;;  %v392_v37 = vsel %vm332_vm1, %v390_v31, 0.0  ;;  %v470_v55 = vadd.f32 %v469_v43, %v468_v34 }
  0xba   : > { %v423_v39 = vrot.slane %v422_v36, 4  ;;  %v393_v40 = vrot.slane %v392_v37, 4  ;;  %v383_v41 = vrot.slane %v382_v33, 1  ;;  %v436_v42 = vsel %vm332_vm1, %v434_v35, 0.0 }
  0xbb   : > { %v437_v46 = vrot.slane %v436_v42, 4  ;;  %v342_v61 = vadd.f32 %v341_v47, %v340_v38  ;;  %v471_v5 = vrot.slane %v470_v55, 1 }
  0xbc   : > { %v424_v44 = vadd.f32 %v423_v39, %v422_v36  ;;  %v394_v45 = vadd.f32 %v393_v40, %v392_v37  ;;  %v384_v51 = vadd.f32 %v383_v41, %v382_v33 }
  0xbd   : > { %v438_v53 = vadd.f32 %v437_v46, %v436_v42  ;;  %v2096_v16 = vmul.f32 0.00390625, %v342_v61  ;;  %v472_v19 = vadd.f32 %v471_v5, %v470_v55 }
  0xbe   : > { %v425_v48 = vrot.slane %v424_v44, 2  ;;  %v347_v49 = vpop.xlane.xlu0 %346  ;;  %v476_v50 = vpop.xlane.xlu1 %475  ;;  %v395_v52 = vrot.slane %v394_v45, 2  ;;  %v2089_v0 = vmul.f32 0.00390625, %v384_v51 }
  0xbf   : > { %v348_v54 = vsel %vm332_vm1, %v347_v49, 0.0  ;;  %v439_v59 = vrot.slane %v438_v53, 2  ;;  %v478_v60 = vrot.slane %v476_v50, 6  ;;  %v356_v29 = vmul.f32 %v2096_v16, %v2096_v16 }
  0xc0   : > { %v426_v56 = vadd.f32 %v425_v48, %v424_v44  ;;  %v349_v57 = vrot.slane %v348_v54, 4  ;;  %v396_v58 = vadd.f32 %v395_v52, %v394_v45  ;;  %v400_v15 = vmul.f32 %v2089_v0, %v2089_v0 }
  0xc1   : > { %v440_v3 = vadd.f32 %v439_v59, %v438_v53  ;;  %v480_v4 = vsel %vm332_vm1, %v478_v60, 0.0  ;;  %v2102_v30 = vmul.f32 0.00390625, %v472_v19 }
  0xc2   : > { %v427_v62 = vrot.slane %v426_v56, 1  ;;  %v350_v63 = vadd.f32 %v349_v57, %v348_v54  ;;  %v397_v2 = vrot.slane %v396_v58, 1  ;;  %v481_v8 = vrot.slane %v480_v4, 4 }
  0xc3   : > { %v441_v10 = vrot.slane %v440_v3, 1  ;;  %v488_v36 = vmul.f32 %v2102_v30, %v2102_v30 }
  0xc4   : > { %v428_v6 = vadd.f32 %v427_v62, %v426_v56  ;;  %v351_v7 = vrot.slane %v350_v63, 2  ;;  %v398_v9 = vadd.f32 %v397_v2, %v396_v58  ;;  %v482_v14 = vadd.f32 %v481_v8, %v480_v4 }
  0xc5   : > { %v442_v18 = vadd.f32 %v441_v10, %v440_v3  ;;  %v402_v3 = vsub.f32 %v2062_v1, %v2089_v0  ;;  %v358_v4 = vsub.f32 %v2062_v1, %v2096_v16  ;;  %v490_v0 = vsub.f32 %v2062_v1, %v2102_v30 }
  0xc6   : > { %v2092_v11 = vmul.f32 0.00390625, %v428_v6  ;;  %v352_v13 = vadd.f32 %v351_v7, %v350_v63  ;;  %v399_v17 = vmul.f32 0.00390625, %v398_v9  ;;  %v483_v22 = vrot.slane %v482_v14, 2 }
  0xc7   : > { %v443_v24 = vmul.f32 0.00390625, %v442_v18 }
  0xc8   : > { %v444_v20 = vmul.f32 %v2092_v11, %v2092_v11  ;;  %v353_v21 = vrot.slane %v352_v13, 1  ;;  %v401_v23 = vsub.f32 %v399_v17, %v400_v15  ;;  %v484_v26 = vadd.f32 %v483_v22, %v482_v14 }
  0xc9   : > { %v446_v6 = vsub.f32 %v2062_v1, %v2092_v11  ;;  %v511_v11 = vpop.permute.xlu2 %510 }
  0xca   : > { %v354_v25 = vadd.f32 %v353_v21, %v352_v13  ;;  %v403_v27 = vadd.f32 1e-05, %v401_v23  ;;  %v445_v28 = vsub.f32 %v443_v24, %v444_v20  ;;  %v485_v32 = vrot.slane %v484_v26, 1 }
  0xcc   : > { %v355_v31 = vmul.f32 0.00390625, %v354_v25  ;;  %1603 = vrsqrt.f32 %v403_v27  ;;  %v447_v33 = vadd.f32 1e-05, %v445_v28  ;;  %v486_v35 = vadd.f32 %v485_v32, %v484_v26 }
  0xcd   : > { %vm410_vm7 = vweird.f32 %v403_v27 }
  0xce   : > { %v357_v34 = vsub.f32 %v355_v31, %v356_v29  ;;  %1605 = vrsqrt.f32 %v447_v33  ;;  %v487_v38 = vmul.f32 0.00390625, %v486_v35  ;;  %vm454_vm8 = vweird.f32 %v447_v33 }
  0xd0   : > { %v359_v37 = vadd.f32 1e-05, %v357_v34  ;;  %v489_v39 = vsub.f32 %v487_v38, %v488_v36 }
  0xd1   : > { %v516_v20 = vpop.permute.xlu0 %515 }
  0xd2   : > { %1607 = vrsqrt.f32 %v359_v37  ;;  %v1604_v40 = vpop.eup %1603  ;;  %v491_v42 = vadd.f32 1e-05, %v489_v39  ;;  %vm366_vm10 = vweird.f32 %v359_v37 }
  0xd3   : > { %v405_v41 = vmul.f32 %v1604_v40, %v403_v27  ;;  %vm411_vm4 = vweird.f32 %v1604_v40 }
  0xd4   : > { %v1606_v43 = vpop.eup %1605  ;;  %1609 = vrsqrt.f32 %v491_v42  ;;  %vm2106_vm9 = vmor %vm410_vm7, %vm411_vm4  ;;  %vm498_vm15 = vweird.f32 %v491_v42 }
  0xd5   : > { %v406_v44 = vmul.f32 %v1604_v40, %v405_v41  ;;  %v449_v45 = vmul.f32 %v1606_v43, %v447_v33  ;;  %vm455_vm5 = vweird.f32 %v1606_v43  ;;  %v2151_v41 = vld [vmem:[#allocation5 + $0x1a] ss:$0 sm:$0xff] }
  0xd6   : > { %vm456_vm11 = vmor %vm454_vm8, %vm455_vm5  ;;  %vm506_vm5 = vcmask 1045504  }
  0xd7   : > { %v407_v47 = vmul.f32 0.5, %v406_v44  ;;  %v450_v48 = vmul.f32 %v1606_v43, %v449_v45 }
  0xd8   : > { %v1608_v46 = vpop.eup %1607 }
  0xd9   : > { %v361_v49 = vmul.f32 %v1608_v46, %v359_v37  ;;  %v451_v50 = vmul.f32 0.5, %v450_v48  ;;  %v408_v51 = vsub.f32 1.5, %v407_v47  ;;  %vm367_vm6 = vweird.f32 %v1608_v46 }
  0xda   : > { %v1610_v53 = vpop.eup %1609  ;;  %vm368_vm12 = vmor %vm366_vm10, %vm367_vm6  ;;  %vm828_vm10 = vcmask 719872  }
  0xdb   : > { %v362_v52 = vmul.f32 %v1608_v46, %v361_v49  ;;  %v452_v54 = vsub.f32 1.5, %v451_v50  ;;  %v493_v56 = vmul.f32 %v1610_v53, %v491_v42  ;;  %v409_v57 = vmul.f32 %v1604_v40, %v408_v51  ;;  %v2153_v42 = vld [vmem:[#allocation5 + $0xf] ss:$0 sm:$0xff] }
  0xdc   : > { %vm499_vm13 = vweird.f32 %v1610_v53 }
  0xdd   : > { %v363_v55 = vmul.f32 0.5, %v362_v52  ;;  %v453_v58 = vmul.f32 %v1606_v43, %v452_v54  ;;  %v494_v60 = vmul.f32 %v1610_v53, %v493_v56  ;;  %v413_v63 = vsel %vm2106_vm9, %v1604_v40, %v409_v57  ;;  %vm500_vm4 = vmor %vm498_vm15, %vm499_vm13  ;;  %v2149_v40 = vld [vmem:[#allocation5 + $0xd] ss:$0 sm:$0xff]  ;;  %v2161_v52 = vld [vmem:[#allocation5 + $0xb] ss:$0 sm:$0xff] }
  0xde   : > { %v414_v10 = vmul.f32 %v413_v63, %v402_v3  ;;  %v2164_v57 = vld [vmem:[#allocation5 + $0xc] ss:$0 sm:$0xff] }
  0xdf   : > { %v364_v59 = vsub.f32 1.5, %v363_v55  ;;  %v495_v2 = vmul.f32 0.5, %v494_v60  ;;  %v457_v5 = vsel %vm456_vm11, %v1606_v43, %v453_v58  ;;  %v2155_v43 = vld [vmem:[#allocation5 + $0xe] ss:$0 sm:$0xff]  ;;  %v2167_v60 = vld [vmem:[#allocation5 + $0x9] ss:$0 sm:$0xff] }
  0xe0   : > { %v458_v13 = vmul.f32 %v457_v5, %v446_v6 }
  0xe1   : > { %v365_v62 = vmul.f32 %v1608_v46, %v364_v59  ;;  %v496_v8 = vsub.f32 1.5, %v495_v2 }
  0xe3   : > { %v369_v7 = vsel %vm368_vm12, %v1608_v46, %v365_v62  ;;  %v497_v14 = vmul.f32 %v1610_v53, %v496_v8 }
  0xe4   : > { %v370_v9 = vmul.f32 %v369_v7, %v358_v4 }
  0xe5   : > { %v501_v16 = vsel %vm500_vm4, %v1610_v53, %v497_v14  ;;  %v2175_v14 = vld [vmem:[#allocation5 + $0xa] ss:$0 sm:$0xff] }
  0xe6   : > { %v503_v15 = vsel %vm332_vm1, %v370_v9, %v414_v10  ;;  %v502_v18 = vmul.f32 %v501_v16, %v490_v0  ;;  %v2172_v10 = vld [vmem:[#allocation5 + $0x8] ss:$0 sm:$0xff] }
  0xe7   : > { %v505_v17 = vsel %vm504_vm14, %v503_v15, %v458_v13 }
  0xe8   : > { %v507_v19 = vsel %vm506_vm5, %v505_v17, %v502_v18 }
  0xe9   : > { %v513_v21 = vmul.f32 %v511_v11, %v507_v19 }
  0xeb   : > { %v518_v22 = vadd.f32 %v516_v20, %v513_v21  ;;  %v2179_v21 = vld [vmem:[#allocation5 + $0x19] ss:$0 sm:$0xff] }
  0xed   : > { %v519_v23 = vsub.f32 0.0, %v518_v22 }
  0xef   : > { %v520_v24 = vmul.f32 1.442695, %v519_v23 }
  0xf1   : > { %1611 = vpow2.f32 %v520_v24 }
  0xf7   : > { %v1612_v25 = vpop.eup %1611 }
  0xf8   : > { %v522_v26 = vadd.f32 1.0, %v1612_v25 }
  0xfa   : > { %1613 = vrcp.f32 %v522_v26  ;;  %v534_v29 = vand.u32 2147483648, %v522_v26  ;;  %v532_v31 = vand.u32 2147483647, %v522_v26  ;;  %vm528_vm7 = vweird.f32 %v522_v26 }
  0xfc   : > { %v535_v33 = vor.u32 1.1754944e-38, %v534_v29  ;;  %vm533_vm9 = vcmp.eq.f32.partialorder %v532_v31, 8.507059e+37  ;;  %v2187_v29 = vld [vmem:[#allocation5 + $0x6] ss:$0 sm:$0xff] }
 0x100   : > { %v1614_v1 = vpop.eup %1613 }
 0x101   : > { %v524_v27 = vmul.f32 %v1614_v1, %v522_v26  ;;  %vm529_vm6 = vweird.f32 %v1614_v1  ;;  %v2182_v26 = vld [vmem:[#allocation5 + $0x7] ss:$0 sm:$0xff] }
 0x102   : > { %vm530_vm8 = vmor %vm528_vm7, %vm529_vm6 }
 0x103   : > { %v525_v28 = vsub.f32 1.0, %v524_v27 }
 0x105   : > { %v526_v30 = vmul.f32 %v1614_v1, %v525_v28  ;;  %v2185_v28 = vld [vmem:[#allocation5 + $0x17] ss:$0 sm:$0xff] }
 0x107   : > { %v527_v32 = vadd.f32 %v1614_v1, %v526_v30 }
 0x109   : > { %v531_v34 = vsel %vm530_vm8, %v1614_v1, %v527_v32 }
 0x10a   : > { %v536_v35 = vsel %vm533_vm9, %v535_v33, %v531_v34 }
 0x10b   : > { %v538_v36 = vmul.f32 %v536_v35, %v518_v22 }
 0x10d   : > { %713 = vrot.lane.b32.xlu0 %v538_v36, %s1863_s26  ;;  %636 = vrot.lane.b32.xlu2 %v538_v36, %s1864_s7  ;;  %v634_v46 = vmul.f32 %v2149_v40, %v538_v36 }
 0x10e   : > { %643 = vrot.lane.b32.xlu1 %v538_v36, %s1865_s23 }
 0x10f   : > { %v635_v54 = vpack.c.bf16 %v634_v46, %v634_v46 }
 0x111   : > { %v746_v63 = vunpack.c.l.b16 %v635_v54 }
 0x113   : > { %v747_v9 = vpack.c.b16 %v746_v63, %v746_v63 }
 0x115   : > { %596 = vrot.lane.b32.xlu0 %v538_v36, %s2423_s24  ;;  %617 = vrot.lane.b32.xlu2 %v538_v36, %s1867_s27  ;;  %s2431_s24 = smov 39  }
 0x116   : > { %624 = vrot.lane.b32.xlu1 %v538_v36, %s1868_s28 }
 0x11d   : > { %575 = vrot.lane.b32.xlu0 %v538_v36, %s2422_s6  ;;  %603 = vrot.lane.b32.xlu2 %v538_v36, %s1870_s13  ;;  %s2430_s6 = smov 89  }
 0x11e   : > { %610 = vrot.lane.b32.xlu1 %v538_v36, %s2424_s14  ;;  %s2432_s14 = smov 25  }
 0x125   : > { %692 = vrot.lane.b32.xlu0 %v538_v36, %s2425_s15  ;;  %720 = vrot.lane.b32.xlu2 %v538_v36, %s2426_s16  ;;  %s2433_s15 = smov 97   ;;  %s2438_s16 = smov 41  }
 0x126   : > { %589 = vrot.lane.b32.xlu1 %v538_v36, %s2427_s9  ;;  %s1882_s9 = smov 33  }
 0x12d   : > { %671 = vrot.lane.b32.xlu0 %v538_v36, %s2428_s22  ;;  %699 = vrot.lane.b32.xlu2 %v538_v36, %s2429_s17  ;;  %s1883_s22 = smov 32   ;;  %s1884_s17 = smov 103  }
 0x12e   : > { %706 = vrot.lane.b32.xlu1 %v538_v36, %s2430_s6  ;;  %s2436_s6 = smov 40  }
 0x135   : > { %554 = vrot.lane.b32.xlu0 %v538_v36, %s2431_s24  ;;  %582 = vrot.lane.b32.xlu2 %v538_v36, %s2432_s14  ;;  %s2437_s24 = smov 119   ;;  %s2434_s14 = smov 105  }
 0x136   : > { %685 = vrot.lane.b32.xlu1 %v538_v36, %s2433_s15  ;;  %s2435_s15 = smov 120  }
 0x13d   : > { %540 = vrot.lane.b32.xlu0 %v538_v36, %s2438_s16  ;;  %561 = vrot.lane.b32.xlu2 %v538_v36, %s1882_s9  ;;  %s2456_s16 = smov 95  }
 0x13e   : > { %568 = vrot.lane.b32.xlu1 %v538_v36, %s1883_s22 }
 0x145   : > { %678 = vrot.lane.b32.xlu2 %v538_v36, %s1884_s17 }
 0x146   : > { %547 = vrot.lane.b32.xlu1 %v538_v36, %s2436_s6  ;;  %s2454_s6 = smov 8  }
 0x14d   : > { %657 = vrot.lane.b32.xlu2 %v538_v36, %s2437_s24  ;;  %s2455_s24 = smov 31  }
 0x14e   : > { %664 = vrot.lane.b32.xlu1 %v538_v36, %s2434_s14  ;;  %s2452_s14 = smov 23  }
 0x155   : > { %650 = vrot.lane.b32.xlu2 %v538_v36, %s2435_s15  ;;  %s2453_s15 = smov 87  }
 0x167   : > { %v637_v37 = vpop.permute.xlu2 %636 }
 0x168   : > { %v641_v51 = vmul.f32 %v2155_v43, %v637_v37 }
 0x16a   : > { %v642_v58 = vpack.c.bf16 %v641_v51, %v641_v51 }
 0x16f   : > { %v618_v38 = vpop.permute.xlu2 %617 }
 0x170   : > { %v622_v59 = vmul.f32 %v2161_v52, %v618_v38  ;;  %v2193_v38 = vld [vmem:[#allocation5 + $0x16] ss:$0 sm:$0xff] }
 0x172   : > { %v623_v6 = vpack.c.bf16 %v622_v59, %v622_v59 }
 0x174   : > { %v743_v0 = vunpack.c.l.b16 %v623_v6  ;;  %v2208_v6 = vld [vmem:[#allocation5 + $0x14] ss:$0 sm:$0xff] }
 0x176   : > { %v744_v19 = vpack.c.b16 %v743_v0, %v743_v0 }
 0x177   : > { %v604_v39 = vpop.permute.xlu2 %603 }
 0x178   : > { %v608_v7 = vmul.f32 %v2167_v60, %v604_v39 }
 0x17a   : > { %v609_v15 = vpack.c.bf16 %v608_v7, %v608_v7 }
 0x17c   : > { %v740_v20 = vunpack.c.l.b16 %v609_v15 }
 0x17e   : > { %v741_v1 = vpack.c.b16 %v740_v20, %v740_v20 }
 0x17f   : > { %v714_v44 = vpop.permute.xlu0 %713  ;;  %v721_v45 = vpop.permute.xlu2 %720 }
 0x180   : > { %v725_v47 = vmul.f32 %v2151_v41, %v721_v45  ;;  %v644_v48 = vpop.permute.xlu1 %643  ;;  %v718_v27 = vmul.f32 %v2179_v21, %v714_v44  ;;  %v2195_v44 = vld [vmem:[#allocation5 + $0x18] ss:$0 sm:$0xff] }
 0x181   : > { %v648_v49 = vmul.f32 %v2153_v42, %v644_v48 }
 0x182   : > { %v726_v50 = vpack.c.bf16 %v725_v47, %v725_v47  ;;  %v719_v34 = vpack.c.bf16 %v718_v27, %v718_v27 }
 0x183   : > { %v649_v53 = vpack.c.bf16 %v648_v49, %v648_v49 }
 0x184   : > { %v833_v55 = vsel %vm504_vm14, %v726_v50, 0  ;;  %v796_v46 = vunpack.c.l.b16 %v719_v34 }
 0x185   : > { %v749_v56 = vunpack.c.l.b16 %v649_v53  ;;  %850 = vmatpush.bf16.msra.mxu1 %v833_v55 }
 0x186   : > { %v797_v55 = vpack.c.b16 %v796_v46, %v796_v46  ;;  %v2225_v46 = vld [vmem:[#allocation5 + $0x1] ss:$0 sm:$0xff] }
 0x187   : > { %v750_v61 = vpack.c.b16 %v749_v56, %v749_v56  ;;  %v597_v62 = vpop.permute.xlu0 %596  ;;  %v700_v5 = vpop.permute.xlu2 %699 }
 0x188   : > { %v625_v2 = vpop.permute.xlu1 %624  ;;  %v601_v11 = vmul.f32 %v2172_v10, %v597_v62  ;;  %v704_v35 = vmul.f32 %v2185_v28, %v700_v5  ;;  %v2206_v5 = vld [vmem:[#allocation5 + $0x3] ss:$0 sm:$0xff] }
 0x189   : > { %v629_v3 = vmul.f32 %v2164_v57, %v625_v2  ;;  %v781_v4 = vsel %vm504_vm14, %v642_v58, %v750_v61  ;;  %v2200_v58 = vld [vmem:[#allocation5 + $0x5] ss:$0 sm:$0xff]  ;;  %v2203_v2 = vld [vmem:[#allocation5 + $0x15] ss:$0 sm:$0xff] }
 0x18a   : > { %835 = vmatpush.bf16.msra.mxu0 %v781_v4  ;;  %v602_v24 = vpack.c.bf16 %v601_v11, %v601_v11  ;;  %v705_v47 = vpack.c.bf16 %v704_v35, %v704_v35  ;;  %v2222_v35 = vld [vmem:[#allocation5 + $0x13] ss:$0 sm:$0xff] }
 0x18b   : > { %v630_v8 = vpack.c.bf16 %v629_v3, %v629_v3 }
 0x18c   : > { %v769_v32 = vsel %vm504_vm14, %v602_v24, %v741_v1  ;;  %v793_v56 = vunpack.c.l.b16 %v705_v47 }
 0x18d   : > { %v777_v13 = vsel %vm504_vm14, %v630_v8, %v747_v9 }
 0x18e   : > { %836 = vmatpush.bf16.msra.mxu0 %v777_v13  ;;  %v794_v3 = vpack.c.b16 %v793_v56, %v793_v56  ;;  %v539_v56 = vld [vmem:[#allocation8] sm:$0xff] }
 0x18f   : > { %v576_v16 = vpop.permute.xlu0 %575  ;;  %v583_v23 = vpop.permute.xlu2 %582 }
 0x190   : > { %v611_v17 = vpop.permute.xlu1 %610  ;;  %v587_v36 = vmul.f32 %v2187_v29, %v583_v23  ;;  %v580_v4 = vmul.f32 %v2200_v58, %v576_v16 }
 0x191   : > { %v615_v18 = vmul.f32 %v2175_v14, %v611_v17 }
 0x192   : > { %v588_v48 = vpack.c.bf16 %v587_v36, %v587_v36  ;;  %v581_v0 = vpack.c.bf16 %v580_v4, %v580_v4  ;;  %v2236_v4 = vld [vmem:[#allocation5 + $0x10] ss:$0 sm:$0xff] }
 0x193   : > { %v616_v22 = vpack.c.bf16 %v615_v18, %v615_v18  ;;  %v2214_v18 = vld [vmem:[#allocation5 + $0x2] ss:$0 sm:$0xff] }
 0x194   : > { %v734_v23 = vunpack.c.l.b16 %v581_v0 }
 0x195   : > { %v773_v25 = vsel %vm504_vm14, %v616_v22, %v744_v19  ;;  %v2216_v19 = vld [vmem:[#allocation5 + $0x4] ss:$0 sm:$0xff]  ;;  %v1889_v22 = vmov 2  }
 0x196   : > { %837 = vmatpush.bf16.msra.mxu0 %v773_v25  ;;  %1572 = vset.pattern.permute.xlu1 %v1889_v22 }
 0x197   : > { %v693_v33 = vpop.permute.xlu0 %692  ;;  %v562_v45 = vpop.permute.xlu2 %561  ;;  %819 = vperm.xlu1 %1572, %v2078_v12  }
 0x198   : > { %v590_v30 = vpop.permute.xlu1 %589  ;;  %v697_v51 = vmul.f32 %v2193_v38, %v693_v33  ;;  %v566_v15 = vmul.f32 %v2206_v5, %v562_v45  ;;  %v735_v33 = vpack.c.b16 %v734_v23, %v734_v23 }
 0x199   : > { %v594_v31 = vmul.f32 %v2182_v26, %v590_v30 }
 0x19a   : > { %838 = vmatpush.bf16.msra.mxu0 %v769_v32  ;;  %v698_v62 = vpack.c.bf16 %v697_v51, %v697_v51  ;;  %v567_v24 = vpack.c.bf16 %v566_v15, %v566_v15 }
 0x19b   : > { %v595_v37 = vpack.c.bf16 %v594_v31, %v594_v31 }
 0x19c   : > { %v812_v13 = vsel %vm504_vm14, %v698_v62, %v794_v3  ;;  %v731_v34 = vunpack.c.l.b16 %v567_v24 }
 0x19d   : > { %v737_v39 = vunpack.c.l.b16 %v595_v37 }
 0x19e   : > { %v732_v47 = vpack.c.b16 %v731_v34, %v731_v34 }
 0x19f   : > { %v738_v49 = vpack.c.b16 %v737_v39, %v737_v39  ;;  %v672_v61 = vpop.permute.xlu0 %671  ;;  %v679_v7 = vpop.permute.xlu2 %678 }
 0x1a0   : > { %v707_v50 = vpop.permute.xlu1 %706  ;;  %v683_v17 = vmul.f32 %v2208_v6, %v679_v7  ;;  %v2238_v7 = vld [vmem:[#allocation5 + $0x12] ss:$0 sm:$0xff] }
 0x1a1   : > { %v711_v53 = vmul.f32 %v2195_v44, %v707_v50  ;;  %v765_v54 = vsel %vm504_vm14, %v588_v48, %v738_v49  ;;  %v676_v48 = vmul.f32 %v2222_v35, %v672_v61  ;;  %v2228_v49 = vld [vmem:[#allocation5 + $0x11] ss:$0 sm:$0xff]  ;;  %v2230_v50 = vld [vmem:[#allocation5] ss:$0 sm:$0xff] }
 0x1a2   : > { %839 = vmatpush.bf16.msra.mxu0 %v765_v54  ;;  %v684_v25 = vpack.c.bf16 %v683_v17, %v683_v17 }
 0x1a3   : > { %v712_v59 = vpack.c.bf16 %v711_v53, %v711_v53 }
 0x1a5   : > { %v816_v63 = vsel %vm504_vm14, %v712_v59, %v797_v55  ;;  %v677_v59 = vpack.c.bf16 %v676_v48, %v676_v48 }
 0x1a6   : > { %851 = vmatpush.bf16.msra.mxu1 %v816_v63 }
 0x1a7   : > { %v555_v20 = vpop.permute.xlu0 %554  ;;  %v658_v37 = vpop.permute.xlu2 %657 }
 0x1a8   : > { %v686_v8 = vpop.permute.xlu1 %685  ;;  %v559_v30 = vmul.f32 %v2214_v18, %v555_v20  ;;  %v662_v62 = vmul.f32 %v2228_v49, %v658_v37 }
 0x1a9   : > { %v690_v9 = vmul.f32 %v2203_v2, %v686_v8  ;;  %v823_v8 = vunpack.c.l.b16 %v539_v56 }
 0x1aa   : > { %852 = vmatpush.bf16.msra.mxu1 %v812_v13  ;;  %v560_v39 = vpack.c.bf16 %v559_v30, %v559_v30  ;;  %v787_v13 = vunpack.c.l.b16 %v677_v59  ;;  %v663_v0 = vpack.c.bf16 %v662_v62, %v662_v62  ;;  %v824_v30 = vunpack.c.h.b16 %v539_v56 }
 0x1ab   : > { %v691_v11 = vpack.c.bf16 %v690_v9, %v690_v9  ;;  %v825_v23 = vpack.c.b16 %v823_v8, %v823_v8  ;;  %v1891_v62 = vmov 4  }
 0x1ac   : > { %v757_v55 = vsel %vm504_vm14, %v560_v39, %v732_v47  ;;  %v788_v24 = vpack.c.b16 %v787_v13, %v787_v13  ;;  %v826_v34 = vpack.c.b16 %v824_v30, %v824_v30  ;;  %1574 = vset.pattern.permute.xlu2 %v1891_v62 }
 0x1ad   : > { %v790_v16 = vunpack.c.l.b16 %v691_v11 }
 0x1af   : > { %v791_v1 = vpack.c.b16 %v790_v16, %v790_v16  ;;  %v541_v51 = vpop.permute.xlu0 %540  ;;  %v651_v9 = vpop.permute.xlu2 %650 }
 0x1b0   : > { %v569_v27 = vpop.permute.xlu1 %568  ;;  %v545_v63 = vmul.f32 %v2230_v50, %v541_v51  ;;  %v655_v16 = vmul.f32 %v2236_v4, %v651_v9 }
 0x1b1   : > { %v573_v31 = vmul.f32 %v2216_v19, %v569_v27  ;;  %v808_v32 = vsel %vm504_vm14, %v684_v25, %v791_v1  ;;  %v784_v25 = vunpack.c.l.b16 %v663_v0 }
 0x1b2   : > { %853 = vmatpush.bf16.msra.mxu1 %v808_v32  ;;  %v546_v15 = vpack.c.bf16 %v545_v63, %v545_v63  ;;  %v656_v27 = vpack.c.bf16 %v655_v16, %v655_v16 }
 0x1b3   : > { %v574_v36 = vpack.c.bf16 %v573_v31, %v573_v31  ;;  %v785_v32 = vpack.c.b16 %v784_v25, %v784_v25 }
 0x1b5   : > { %v761_v45 = vsel %vm504_vm14, %v574_v36, %v735_v33  ;;  %v800_v33 = vsel %vm504_vm14, %v656_v27, %v785_v32  ;;  %v1890_v36 = vmov 3  }
 0x1b6   : > { %840 = vmatpush.bf16.msra.mxu0 %v761_v45  ;;  %1573 = vset.pattern.permute.xlu1 %v1890_v36 }
 0x1b8   : > { %v548_v53 = vpop.permute.xlu1 %547 }
 0x1b9   : > { %v552_v54 = vmul.f32 %v2225_v46, %v548_v53 }
 0x1ba   : > { %841 = vmatpush.bf16.msra.mxu0 %v757_v55 }
 0x1bb   : > { %v553_v3 = vpack.c.bf16 %v552_v54, %v552_v54 }
 0x1bd   : > { %v728_v61 = vunpack.c.l.b16 %v553_v3 }
 0x1bf   : > { %v729_v17 = vpack.c.b16 %v728_v61, %v728_v61 }
 0x1c0   : > { %v665_v11 = vpop.permute.xlu1 %664 }
 0x1c1   : > { %v669_v20 = vmul.f32 %v2238_v7, %v665_v11  ;;  %v753_v22 = vsel %vm504_vm14, %v546_v15, %v729_v17 }
 0x1c2   : > { %842 = vmatpush.bf16.msra.mxu0 %v753_v22 }
 0x1c3   : > { %v670_v1 = vpack.c.bf16 %v669_v20, %v669_v20 }
 0x1c5   : > { %843 = vmatmul.bf16.vlgmr.msra.gmra.mxu0 %v825_v23  ;;  %v804_v31 = vsel %vm504_vm14, %v670_v1, %v788_v24 }
 0x1c6   : > { %854 = vmatpush.bf16.msra.mxu1 %v804_v31 }
 0x1ca   : > { %855 = vmatpush.bf16.msra.mxu1 %v800_v33 }
 0x1cd   : > { %1443 = vmatmul.msk.bf16.vlgmr.msra.gmra.mxu1 %vm828_vm10, %v826_v34 }
 0x209   : > { %v820_v39 = vpop.permute.xlu1 %819 }
 0x242   : > { %v844_v37 = vpop.f32.mrf.mxu0 }
 0x243   : > { %v845_v45 = vadd.f32 %v844_v37, %v820_v39 }
 0x24a   : > { %v846_v47 = vpop.f32.mrf.mxu0  ;;  %v857_v48 = vpop.f32.mrf.mxu1 }
 0x24b   : > { %v2246_v51 = vadd.f32 %v857_v48, %v845_v45 }
 0x24d   : > { %v942_v53 = vsel %vm415_vm3, %v2246_v51, 0.0  ;;  %v899_v54 = vsel %vm371_vm0, %v2246_v51, 0.0  ;;  %v861_v55 = vsel %vm332_vm1, %v2246_v51, 0.0  ;;  %v872_v56 = vmul.f32 %v2246_v51, %v2246_v51 }
 0x24e   : > { %943 = vadd.xlane.f32.xlu2 %v942_v53  ;;  %900 = vadd.xlane.f32.xlu0 %v899_v54  ;;  %v985_v63 = vsel %vm459_vm2, %v2246_v51, 0.0 }
 0x24f   : > { %862 = vadd.xlane.f32.xlu1 %v861_v55  ;;  %v913_v3 = vsel %vm371_vm0, %v872_v56, 0.0  ;;  %v956_v61 = vsel %vm415_vm3, %v872_v56, 0.0  ;;  %v999_v8 = vsel %vm459_vm2, %v872_v56, 0.0  ;;  %v873_v9 = vsel %vm332_vm1, %v872_v56, 0.0 }
 0x252   : > { %v859_v59 = vpop.f32.mrf.mxu1 }
 0x256   : > { %986 = vadd.xlane.f32.xlu0 %v985_v63  ;;  %914 = vadd.xlane.f32.xlu2 %v913_v3 }
 0x257   : > { %957 = vadd.xlane.f32.xlu1 %v956_v61 }
 0x25e   : > { %1000 = vadd.xlane.f32.xlu0 %v999_v8  ;;  %874 = vadd.xlane.f32.xlu2 %v873_v9 }
 0x270   : > { %1032 = vperm.xlu1 %1573, %v2078_v12  }
 0x276   : > { %1037 = vperm.xlu2 %1574, %v2078_v12  }
 0x2c1   : > { %v944_v13 = vpop.xlane.xlu2 %943  ;;  %v901_v0 = vpop.xlane.xlu0 %900 }
 0x2c2   : > { %v946_v15 = vrot.slane %v944_v13, 4  ;;  %v903_v17 = vrot.slane %v901_v0, 2  ;;  %v863_v11 = vpop.xlane.xlu1 %862 }
 0x2c3   : > { %v864_v16 = vsel %vm332_vm1, %v863_v11, 0.0 }
 0x2c4   : > { %v948_v20 = vsel %vm332_vm1, %v946_v15, 0.0  ;;  %v905_v22 = vsel %vm332_vm1, %v903_v17, 0.0  ;;  %v865_v25 = vrot.slane %v864_v16, 4 }
 0x2c5   : > { %v949_v23 = vrot.slane %v948_v20, 4  ;;  %v906_v24 = vrot.slane %v905_v22, 4 }
 0x2c6   : > { %v866_v32 = vadd.f32 %v865_v25, %v864_v16 }
 0x2c7   : > { %v950_v1 = vadd.f32 %v949_v23, %v948_v20  ;;  %v907_v27 = vadd.f32 %v906_v24, %v905_v22 }
 0x2c8   : > { %v867_v55 = vrot.slane %v866_v32, 2 }
 0x2c9   : > { %v951_v30 = vrot.slane %v950_v1, 2  ;;  %v908_v31 = vrot.slane %v907_v27, 2  ;;  %v987_v12 = vpop.xlane.xlu0 %986  ;;  %v915_v33 = vpop.xlane.xlu2 %914 }
 0x2ca   : > { %v989_v34 = vrot.slane %v987_v12, 6  ;;  %v917_v36 = vrot.slane %v915_v33, 2  ;;  %v958_v37 = vpop.xlane.xlu1 %957  ;;  %v868_v13 = vadd.f32 %v867_v55, %v866_v32 }
 0x2cb   : > { %v952_v39 = vadd.f32 %v951_v30, %v950_v1  ;;  %v909_v45 = vadd.f32 %v908_v31, %v907_v27  ;;  %v960_v47 = vrot.slane %v958_v37, 4 }
 0x2cc   : > { %v991_v48 = vsel %vm332_vm1, %v989_v34, 0.0  ;;  %v919_v53 = vsel %vm332_vm1, %v917_v36, 0.0  ;;  %v869_v30 = vrot.slane %v868_v13, 1 }
 0x2cd   : > { %v910_v54 = vrot.slane %v909_v45, 1  ;;  %v992_v56 = vrot.slane %v991_v48, 4  ;;  %v920_v59 = vrot.slane %v919_v53, 4  ;;  %v962_v62 = vsel %vm332_vm1, %v960_v47, 0.0 }
 0x2ce   : > { %v953_v63 = vrot.slane %v952_v39, 1  ;;  %v963_v8 = vrot.slane %v962_v62, 4 }
 0x2cf   : > { %v993_v3 = vadd.f32 %v992_v56, %v991_v48  ;;  %v921_v61 = vadd.f32 %v920_v59, %v919_v53  ;;  %v911_v9 = vadd.f32 %v910_v54, %v909_v45  ;;  %v870_v53 = vadd.f32 %v869_v30, %v868_v13 }
 0x2d0   : > { %v964_v11 = vadd.f32 %v963_v8, %v962_v62  ;;  %v954_v22 = vadd.f32 %v953_v63, %v952_v39 }
 0x2d1   : > { %v994_v0 = vrot.slane %v993_v3, 2  ;;  %v922_v15 = vrot.slane %v921_v61, 2  ;;  %v1001_v17 = vpop.xlane.xlu0 %1000  ;;  %v875_v20 = vpop.xlane.xlu2 %874  ;;  %v2271_v27 = vmul.f32 0.00390625, %v911_v9 }
 0x2d2   : > { %v1003_v16 = vrot.slane %v1001_v17, 6  ;;  %v965_v25 = vrot.slane %v964_v11, 2  ;;  %v876_v12 = vsel %vm332_vm1, %v875_v20, 0.0  ;;  %v2274_v45 = vmul.f32 0.00390625, %v954_v22 }
 0x2d3   : > { %v995_v23 = vadd.f32 %v994_v0, %v993_v3  ;;  %v923_v24 = vadd.f32 %v922_v15, %v921_v61  ;;  %v877_v36 = vrot.slane %v876_v12, 4  ;;  %v927_v56 = vmul.f32 %v2271_v27, %v2271_v27 }
 0x2d4   : > { %v1005_v1 = vsel %vm332_vm1, %v1003_v16, 0.0  ;;  %v966_v34 = vadd.f32 %v965_v25, %v964_v11  ;;  %v970_v61 = vmul.f32 %v2274_v45, %v2274_v45  ;;  %v2282_v11 = vmul.f32 0.00390625, %v870_v53 }
 0x2d5   : > { %v1006_v31 = vrot.slane %v1005_v1, 4  ;;  %v996_v33 = vrot.slane %v995_v23, 1  ;;  %v924_v32 = vrot.slane %v923_v24, 1  ;;  %v878_v48 = vadd.f32 %v877_v36, %v876_v12 }
 0x2d6   : > { %v967_v39 = vrot.slane %v966_v34, 1  ;;  %v884_v30 = vmul.f32 %v2282_v11, %v2282_v11 }
 0x2d7   : > { %v1007_v37 = vadd.f32 %v1006_v31, %v1005_v1  ;;  %v925_v47 = vadd.f32 %v924_v32, %v923_v24  ;;  %v997_v54 = vadd.f32 %v996_v33, %v995_v23  ;;  %v879_v63 = vrot.slane %v878_v48, 2 }
 0x2d8   : > { %v968_v62 = vadd.f32 %v967_v39, %v966_v34 }
 0x2d9   : > { %v1008_v55 = vrot.slane %v1007_v37, 2  ;;  %v926_v59 = vmul.f32 0.00390625, %v925_v47  ;;  %v880_v0 = vadd.f32 %v879_v63, %v878_v48  ;;  %v2280_v15 = vmul.f32 0.00390625, %v997_v54 }
 0x2da   : > { %v969_v9 = vmul.f32 0.00390625, %v968_v62 }
 0x2db   : > { %v1009_v3 = vadd.f32 %v1008_v55, %v1007_v37  ;;  %v928_v8 = vsub.f32 %v926_v59, %v927_v56  ;;  %v881_v20 = vrot.slane %v880_v0, 1  ;;  %v1013_v25 = vmul.f32 %v2280_v15, %v2280_v15 }
 0x2dc   : > { %v971_v16 = vsub.f32 %v969_v9, %v970_v61 }
 0x2dd   : > { %v1010_v17 = vrot.slane %v1009_v3, 1  ;;  %v930_v13 = vadd.f32 1e-05, %v928_v8  ;;  %v882_v24 = vadd.f32 %v881_v20, %v880_v0 }
 0x2de   : > { %v973_v23 = vadd.f32 1e-05, %v971_v16 }
 0x2df   : > { %v1011_v22 = vadd.f32 %v1010_v17, %v1009_v3  ;;  %1615 = vrsqrt.f32 %v930_v13  ;;  %v883_v31 = vmul.f32 0.00390625, %v882_v24  ;;  %vm937_vm3 = vweird.f32 %v930_v13 }
 0x2e0   : > { %1617 = vrsqrt.f32 %v973_v23  ;;  %vm980_vm15 = vweird.f32 %v973_v23 }
 0x2e1   : > { %v1012_v1 = vmul.f32 0.00390625, %v1011_v22  ;;  %v885_v33 = vsub.f32 %v883_v31, %v884_v30  ;;  %v886_v31 = vsub.f32 %v2246_v51, %v2282_v11  ;;  %v972_v11 = vsub.f32 %v2246_v51, %v2274_v45 }
 0x2e3   : > { %v1014_v12 = vsub.f32 %v1012_v1, %v1013_v25  ;;  %v887_v36 = vadd.f32 1e-05, %v885_v33  ;;  %v929_v33 = vsub.f32 %v2246_v51, %v2271_v27 }
 0x2e5   : > { %v1016_v32 = vadd.f32 1e-05, %v1014_v12  ;;  %v1616_v34 = vpop.eup %1615  ;;  %vm894_vm7 = vweird.f32 %v887_v36 }
 0x2e6   : > { %v932_v37 = vmul.f32 %v1616_v34, %v930_v13  ;;  %v1618_v47 = vpop.eup %1617  ;;  %vm938_vm0 = vweird.f32 %v1616_v34 }
 0x2e7   : > { %1619 = vrsqrt.f32 %v1016_v32  ;;  %v975_v48 = vmul.f32 %v1618_v47, %v973_v23  ;;  %vm981_vm2 = vweird.f32 %v1618_v47  ;;  %vm2288_vm13 = vmor %vm937_vm3, %vm938_vm0  ;;  %vm1023_vm6 = vweird.f32 %v1016_v32 }
 0x2e8   : > { %1621 = vrsqrt.f32 %v887_v36  ;;  %v933_v39 = vmul.f32 %v1616_v34, %v932_v37  ;;  %vm2292_vm4 = vmor %vm980_vm15, %vm981_vm2  ;;  %v1015_v37 = vsub.f32 %v2246_v51, %v2280_v15 }
 0x2e9   : > { %v976_v54 = vmul.f32 %v1618_v47, %v975_v48 }
 0x2ea   : > { %v934_v53 = vmul.f32 0.5, %v933_v39 }
 0x2eb   : > { %v977_v56 = vmul.f32 0.5, %v976_v54 }
 0x2ec   : > { %v935_v3 = vsub.f32 1.5, %v934_v53 }
 0x2ed   : > { %v1620_v55 = vpop.eup %1619  ;;  %v978_v61 = vsub.f32 1.5, %v977_v56  ;;  %v1033_v56 = vpop.permute.xlu1 %1032 }
 0x2ee   : > { %v1622_v59 = vpop.eup %1621  ;;  %v1018_v62 = vmul.f32 %v1620_v55, %v1016_v32  ;;  %v936_v16 = vmul.f32 %v1616_v34, %v935_v3  ;;  %vm1024_vm11 = vweird.f32 %v1620_v55 }
 0x2ef   : > { %v889_v63 = vmul.f32 %v1622_v59, %v887_v36  ;;  %v979_v20 = vmul.f32 %v1618_v47, %v978_v61  ;;  %vm895_vm12 = vweird.f32 %v1622_v59  ;;  %vm1025_vm8 = vmor %vm1023_vm6, %vm1024_vm11 }
 0x2f0   : > { %v1019_v8 = vmul.f32 %v1620_v55, %v1018_v62  ;;  %v940_v12 = vsel %vm2288_vm13, %v1616_v34, %v936_v16  ;;  %vm896_vm9 = vmor %vm894_vm7, %vm895_vm12 }
 0x2f1   : > { %v890_v9 = vmul.f32 %v1622_v59, %v889_v63  ;;  %v983_v23 = vsel %vm2292_vm4, %v1618_v47, %v979_v20  ;;  %v941_v48 = vmul.f32 %v940_v12, %v929_v33  ;;  %v1038_v47 = vpop.permute.xlu2 %1037 }
 0x2f2   : > { %v1020_v0 = vmul.f32 0.5, %v1019_v8  ;;  %v984_v34 = vmul.f32 %v983_v23, %v972_v11 }
 0x2f3   : > { %v891_v17 = vmul.f32 0.5, %v890_v9 }
 0x2f4   : > { %v1021_v22 = vsub.f32 1.5, %v1020_v0 }
 0x2f5   : > { %v892_v24 = vsub.f32 1.5, %v891_v17 }
 0x2f6   : > { %v1022_v30 = vmul.f32 %v1620_v55, %v1021_v22 }
 0x2f7   : > { %v893_v13 = vmul.f32 %v1622_v59, %v892_v24 }
 0x2f8   : > { %v1026_v32 = vsel %vm1025_vm8, %v1620_v55, %v1022_v30 }
 0x2f9   : > { %v897_v36 = vsel %vm896_vm9, %v1622_v59, %v893_v13  ;;  %v1027_v53 = vmul.f32 %v1026_v32, %v1015_v37 }
 0x2fa   : > { %v898_v39 = vmul.f32 %v897_v36, %v886_v31 }
 0x2fc   : > { %v1028_v54 = vsel %vm332_vm1, %v898_v39, %v941_v48 }
 0x2fd   : > { %v1029_v27 = vsel %vm504_vm14, %v1028_v54, %v984_v34 }
 0x2fe   : > { %v1030_v62 = vsel %vm506_vm5, %v1029_v27, %v1027_v53 }
 0x2ff   : > { %v1035_v63 = vmul.f32 %v1033_v56, %v1030_v62 }
 0x301   : > { %v1040_v3 = vadd.f32 %v1038_v47, %v1035_v63 }
 0x303   : > { %v1041_v15 = vsub.f32 0.0, %v1040_v3 }
 0x305   : > { %v1042_v55 = vmul.f32 1.442695, %v1041_v15 }
 0x307   : > { %1623 = vpow2.f32 %v1042_v55 }
 0x30d   : > { %v1624_v61 = vpop.eup %1623 }
 0x30e   : > { %v1044_v51 = vadd.f32 1.0, %v1624_v61 }
 0x310   : > { %1625 = vrcp.f32 %v1044_v51  ;;  %v1056_v9 = vand.u32 2147483648, %v1044_v51  ;;  %v1054_v17 = vand.u32 2147483647, %v1044_v51  ;;  %vm1050_vm0 = vweird.f32 %v1044_v51 }
 0x312   : > { %v1057_v20 = vor.u32 1.1754944e-38, %v1056_v9  ;;  %vm1055_vm5 = vcmp.eq.f32.partialorder %v1054_v17, 8.507059e+37 }
 0x316   : > { %v1626_v45 = vpop.eup %1625 }
 0x317   : > { %v1046_v59 = vmul.f32 %v1626_v45, %v1044_v51  ;;  %vm1051_vm1 = vweird.f32 %v1626_v45 }
 0x318   : > { %vm1052_vm2 = vmor %vm1050_vm0, %vm1051_vm1 }
 0x319   : > { %v1047_v8 = vsub.f32 1.0, %v1046_v59 }
 0x31b   : > { %v1048_v0 = vmul.f32 %v1626_v45, %v1047_v8 }
 0x31d   : > { %v1049_v16 = vadd.f32 %v1626_v45, %v1048_v0 }
 0x31f   : > { %v1053_v22 = vsel %vm1052_vm2, %v1626_v45, %v1049_v16 }
 0x320   : > { %v1058_v24 = vsel %vm1055_vm5, %v1057_v20, %v1053_v22 }
 0x321   : > { %v1060_v25 = vmul.f32 %v1058_v24, %v1040_v3 }
 0x323   : > { %1110 = vrot.lane.b32.xlu2 %v1060_v25, %s1868_s28  ;;  %1116 = vrot.lane.b32.xlu1 %v1060_v25, %s1864_s7  ;;  %s2457_s28 = smov 24   ;;  %s2458_s7 = smov 96   ;;  %v1114_v13 = vmul.f32 %v2149_v40, %v1060_v25 }
 0x324   : > { %1120 = vrot.lane.b32.xlu0 %v1060_v25, %s1865_s23  ;;  %s2459_s23 = smov 25  }
 0x325   : > { %v1115_v32 = vpack.c.bf16 %v1114_v13, %v1114_v13 }
 0x327   : > { %v1187_v54 = vunpack.c.l.b16 %v1115_v32 }
 0x329   : > { %v1188_v47 = vpack.c.b16 %v1187_v54, %v1187_v54 }
 0x32b   : > { %1160 = vrot.lane.b32.xlu2 %v1060_v25, %s1863_s26  ;;  %1098 = vrot.lane.b32.xlu1 %v1060_v25, %s1870_s13  ;;  %s2460_s26 = smov 89   ;;  %s2461_s13 = smov 104  }
 0x32c   : > { %1106 = vrot.lane.b32.xlu0 %v1060_v25, %s1867_s27  ;;  %s2462_s27 = smov 97  }
 0x333   : > { %1094 = vrot.lane.b32.xlu2 %v1060_v25, %s2452_s14  ;;  %1164 = vrot.lane.b32.xlu1 %v1060_v25, %s2453_s15  ;;  %s2463_s14 = smov 39   ;;  %s2466_s15 = smov 40  }
 0x334   : > { %1102 = vrot.lane.b32.xlu0 %v1060_v25, %s2454_s6  ;;  %s2465_s6 = smov 119  }
 0x33b   : > { %1082 = vrot.lane.b32.xlu2 %v1060_v25, %s2455_s24  ;;  %1152 = vrot.lane.b32.xlu1 %v1060_v25, %s2456_s16  ;;  %s2464_s24 = smov 41   ;;  %s2467_s16 = smov 120  }
 0x33c   : > { %1090 = vrot.lane.b32.xlu0 %v1060_v25, %s2457_s28  ;;  %s2468_s28 = smov 105  }
 0x343   : > { %1148 = vrot.lane.b32.xlu2 %v1060_v25, %s2458_s7  ;;  %1086 = vrot.lane.b32.xlu1 %v1060_v25, %s2459_s23  ;;  %s2469_s23 = sshll.u32 %s2041_s10, 3 }
 0x344   : > { %1156 = vrot.lane.b32.xlu0 %v1060_v25, %s2460_s26  ;;  %s301_s26 = scalar_lea.vmem [#allocation11], %s2469_s23 }
 0x34b   : > { %1136 = vrot.lane.b32.xlu2 %v1060_v25, %s2461_s13  ;;  %1074 = vrot.lane.b32.xlu1 %v1060_v25, %s1882_s9  ;;  %s1316_s13 = sshll.u32 %s301_s26, 4  ;;  %s1317_s13 = int_to_ptr.vmem [resolvable:$true] %s1316_s13 }
 0x34c   : > { %1144 = vrot.lane.b32.xlu0 %v1060_v25, %s2462_s27 }
 0x353   : > { %1070 = vrot.lane.b32.xlu2 %v1060_v25, %s2463_s14  ;;  %1140 = vrot.lane.b32.xlu1 %v1060_v25, %s1884_s17  ;;  %s1446_s17 = sshll.u32 %s1947_s25, 3  ;;  %s1304_s14 = scalar_lea.sflag [#allocation4], %s2041_s10 }
 0x354   : > { %1078 = vrot.lane.b32.xlu0 %v1060_v25, %s1883_s22  ;;  %s1314_s7 = scalar_lea.hbm %s2420_s5, %s1446_s17 }
 0x355   : > { %s1318_s27 = sshll.u32 %s1314_s7, 4  ;;  %s1319_s27 = int_to_ptr.hbm [resolvable:$true] %s1318_s27 }
 0x356   : > { %s1793_s25 = sshra.s32 %s1319_s27, 4  ;;  %s1794_s25 = int_to_ptr.hbm [resolvable:$true] %s1793_s25 }
 0x357   : > { %p1800_p12 = scmp.lt.s32.totalorder %s1794_s25, %s2420_s5 }
 0x35b   : > { %1062 = vrot.lane.b32.xlu2 %v1060_v25, %s2464_s24  ;;  %1128 = vrot.lane.b32.xlu1 %v1060_v25, %s2465_s6  ;;  %s1795_s24 = scalar_lea.hbm %s1794_s25, 8 }
 0x35c   : > { %1066 = vrot.lane.b32.xlu0 %v1060_v25, %s2466_s15  ;;  %p1796_p1 = scmp.ne.s32.totalorder %s1794_s25, %s1795_s24 }
 0x35e   : > { %p1797_p3 = pnand %p1796_p1, %p2010_p4 }
 0x360   : > { %p1798_p5 = pneg %p1797_p3 }
 0x363   : > { %1124 = vrot.lane.b32.xlu1 %v1060_v25, %s2467_s16  ;;  %s1799_s16 = scalar_lea.hbm %s2420_s5, 16 }
 0x364   : > { %1132 = vrot.lane.b32.xlu0 %v1060_v25, %s2468_s28  ;;  %p1801_p7 = scmp.lt.s32.totalorder %s1799_s16, %s1795_s24 }
 0x366   : > { %p1802_p8 = por %p1801_p7, %p1800_p12 }
 0x368   : > { %p1803_p9 = pnand %p1802_p8, %p1798_p5 }
 0x37d   : > { %v1111_v1 = vpop.permute.xlu2 %1110 }
 0x37e   : > { %v1112_v11 = vmul.f32 %v2164_v57, %v1111_v1 }
 0x380   : > { %v1113_v27 = vpack.c.bf16 %v1112_v11, %v1112_v11 }
 0x382   : > { %v1218_v57 = vsel %vm504_vm14, %v1113_v27, %v1188_v47 }
 0x385   : > { %v1161_v30 = vpop.permute.xlu2 %1160 }
 0x386   : > { %v1162_v20 = vmul.f32 %v2179_v21, %v1161_v30 }
 0x38d   : > { %v1095_v39 = vpop.permute.xlu2 %1094 }
 0x395   : > { %v1117_v31 = vpop.permute.xlu1 %1116  ;;  %v1083_v55 = vpop.permute.xlu2 %1082 }
 0x396   : > { %v1121_v12 = vpop.permute.xlu0 %1120  ;;  %v1118_v23 = vmul.f32 %v2155_v43, %v1117_v31  ;;  %v1163_v31 = vpack.c.bf16 %v1162_v20, %v1162_v20 }
 0x397   : > { %v1122_v33 = vmul.f32 %v2153_v42, %v1121_v12 }
 0x398   : > { %v1119_v48 = vpack.c.bf16 %v1118_v23, %v1118_v23  ;;  %v1237_v23 = vunpack.c.l.b16 %v1163_v31 }
 0x399   : > { %v1123_v37 = vpack.c.bf16 %v1122_v33, %v1122_v33 }
 0x39b   : > { %v1190_v36 = vunpack.c.l.b16 %v1123_v37 }
 0x39d   : > { %v1191_v53 = vpack.c.b16 %v1190_v36, %v1190_v36  ;;  %v1099_v34 = vpop.permute.xlu1 %1098  ;;  %v1149_v1 = vpop.permute.xlu2 %1148 }
 0x39e   : > { %v1107_v56 = vpop.permute.xlu0 %1106  ;;  %v1100_v62 = vmul.f32 %v2167_v60, %v1099_v34 }
 0x39f   : > { %v1108_v40 = vmul.f32 %v2161_v52, %v1107_v56  ;;  %v1222_v42 = vsel %vm504_vm14, %v1119_v48, %v1191_v53  ;;  %v1096_v52 = vmul.f32 %v2172_v10, %v1095_v39  ;;  %v1238_v39 = vpack.c.b16 %v1237_v23, %v1237_v23 }
 0x3a0   : > { %1275 = vmatpush.bf16.msra.mxu2 %v1222_v42  ;;  %v1101_v63 = vpack.c.bf16 %v1100_v62, %v1100_v62 }
 0x3a1   : > { %v1109_v43 = vpack.c.bf16 %v1108_v40, %v1108_v40  ;;  %v1097_v22 = vpack.c.bf16 %v1096_v52, %v1096_v52 }
 0x3a2   : > { %v1181_v45 = vunpack.c.l.b16 %v1101_v63 }
 0x3a3   : > { %v1184_v3 = vunpack.c.l.b16 %v1109_v43 }
 0x3a4   : > { %1276 = vmatpush.bf16.msra.mxu2 %v1218_v57  ;;  %v1182_v17 = vpack.c.b16 %v1181_v45, %v1181_v45 }
 0x3a5   : > { %v1165_v15 = vpop.permute.xlu1 %1164  ;;  %v1185_v8 = vpack.c.b16 %v1184_v3, %v1184_v3  ;;  %v1137_v53 = vpop.permute.xlu2 %1136 }
 0x3a6   : > { %v1166_v61 = vmul.f32 %v2151_v41, %v1165_v15  ;;  %v1103_v51 = vpop.permute.xlu0 %1102  ;;  %v1210_v10 = vsel %vm504_vm14, %v1097_v22, %v1182_v17  ;;  %v1892_v15 = vmov 5   ;;  %v1138_v20 = vmul.f32 %v2222_v35, %v1137_v53 }
 0x3a7   : > { %v1104_v60 = vmul.f32 %v2175_v14, %v1103_v51  ;;  %1575 = vset.pattern.permute.xlu0 %v1892_v15 }
 0x3a8   : > { %v1167_v59 = vpack.c.bf16 %v1166_v61, %v1166_v61 }
 0x3a9   : > { %v1105_v9 = vpack.c.bf16 %v1104_v60, %v1104_v60 }
 0x3aa   : > { %v1273_v0 = vsel %vm504_vm14, %v1167_v59, 0 }
 0x3ab   : > { %v1214_v16 = vsel %vm504_vm14, %v1105_v9, %v1185_v8  ;;  %1290 = vmatpush.bf16.msra.mxu3 %v1273_v0 }
 0x3ac   : > { %1277 = vmatpush.bf16.msra.mxu2 %v1214_v16 }
 0x3ad   : > { %v1153_v41 = vpop.permute.xlu1 %1152  ;;  %v1071_v57 = vpop.permute.xlu2 %1070 }
 0x3ae   : > { %v1091_v24 = vpop.permute.xlu0 %1090  ;;  %v1154_v25 = vmul.f32 %v2185_v28, %v1153_v41  ;;  %v1072_v8 = vmul.f32 %v2214_v18, %v1071_v57  ;;  %v1061_v18 = vld [vmem:[#allocation10] sm:$0xff] }
 0x3af   : > { %v1092_v14 = vmul.f32 %v2182_v26, %v1091_v24  ;;  %v1150_v26 = vmul.f32 %v2193_v38, %v1149_v1 }
 0x3b0   : > { %1278 = vmatpush.bf16.msra.mxu2 %v1210_v10  ;;  %v1155_v12 = vpack.c.bf16 %v1154_v25, %v1154_v25 }
 0x3b1   : > { %v1093_v13 = vpack.c.bf16 %v1092_v14, %v1092_v14  ;;  %v1151_v27 = vpack.c.bf16 %v1150_v26, %v1150_v26  ;;  %v1139_v14 = vpack.c.bf16 %v1138_v20, %v1138_v20  ;;  %v1265_v26 = vunpack.c.h.b16 %v1061_v18 }
 0x3b2   : > { %v1234_v30 = vunpack.c.l.b16 %v1155_v12  ;;  %v1264_v12 = vunpack.c.l.b16 %v1061_v18 }
 0x3b3   : > { %v1178_v33 = vunpack.c.l.b16 %v1093_v13 }
 0x3b4   : > { %v1235_v54 = vpack.c.b16 %v1234_v30, %v1234_v30 }
 0x3b5   : > { %v1087_v37 = vpop.permute.xlu1 %1086  ;;  %v1179_v36 = vpack.c.b16 %v1178_v33, %v1178_v33  ;;  %v1063_v41 = vpop.permute.xlu2 %1062  ;;  %v1228_v33 = vunpack.c.l.b16 %v1139_v14 }
 0x3b6   : > { %v1088_v32 = vmul.f32 %v2187_v29, %v1087_v37  ;;  %v1157_v21 = vpop.permute.xlu0 %1156  ;;  %v1084_v29 = vmul.f32 %v2200_v58, %v1083_v55  ;;  %v1253_v38 = vsel %vm504_vm14, %v1151_v27, %v1235_v54  ;;  %v1627_v58 = vld [vmem:[#allocation7] sm:$0xff]  ;;  %v1064_v10 = vmul.f32 %v2230_v50, %v1063_v41 }
 0x3b7   : > { %v1158_v11 = vmul.f32 %v2195_v44, %v1157_v21  ;;  %1260 = vperm.xlu0 %1575, %v1627_v58   ;;  %v1229_v50 = vpack.c.b16 %v1228_v33, %v1228_v33 }
 0x3b8   : > { %v1089_v28 = vpack.c.bf16 %v1088_v32, %v1088_v32  ;;  %v1085_v43 = vpack.c.bf16 %v1084_v29, %v1084_v29  ;;  %v1065_v35 = vpack.c.bf16 %v1064_v10, %v1064_v10 }
 0x3b9   : > { %v1159_v48 = vpack.c.bf16 %v1158_v11, %v1158_v11 }
 0x3ba   : > { %v1206_v34 = vsel %vm504_vm14, %v1089_v28, %v1179_v36  ;;  %v1175_v61 = vunpack.c.l.b16 %v1085_v43  ;;  %v1266_v36 = vpack.c.b16 %v1264_v12, %v1264_v12 }
 0x3bb   : > { %1279 = vmatpush.bf16.msra.mxu2 %v1206_v34  ;;  %v1257_v56 = vsel %vm504_vm14, %v1159_v48, %v1238_v39 }
 0x3bc   : > { %1291 = vmatpush.bf16.msra.mxu3 %v1257_v56  ;;  %v1176_v52 = vpack.c.b16 %v1175_v61, %v1175_v61 }
 0x3bd   : > { %v1075_v62 = vpop.permute.xlu1 %1074 }
 0x3be   : > { %v1145_v40 = vpop.permute.xlu0 %1144  ;;  %v1076_v44 = vmul.f32 %v2206_v5, %v1075_v62 }
 0x3bf   : > { %v1146_v42 = vmul.f32 %v2203_v2, %v1145_v40  ;;  %v1628_v40 = vld [vmem:[%s2047_s30] sm:$0xff] }
 0x3c0   : > { %1292 = vmatpush.bf16.msra.mxu3 %v1253_v38  ;;  %v1077_v63 = vpack.c.bf16 %v1076_v44, %v1076_v44 }
 0x3c1   : > { %v1147_v47 = vpack.c.bf16 %v1146_v42, %v1146_v42 }
 0x3c2   : > { %v1172_v5 = vunpack.c.l.b16 %v1077_v63 }
 0x3c3   : > { %v1231_v3 = vunpack.c.l.b16 %v1147_v47 }
 0x3c4   : > { %v1173_v17 = vpack.c.b16 %v1172_v5, %v1172_v5 }
 0x3c5   : > { %v1141_v51 = vpop.permute.xlu1 %1140  ;;  %v1232_v60 = vpack.c.b16 %v1231_v3, %v1231_v3 }
 0x3c6   : > { %v1142_v55 = vmul.f32 %v2208_v6, %v1141_v51  ;;  %v1079_v45 = vpop.permute.xlu0 %1078  ;;  %v1073_v6 = vpack.c.bf16 %v1072_v8, %v1072_v8 }
 0x3c7   : > { %v1080_v2 = vmul.f32 %v2216_v19, %v1079_v45 }
 0x3c8   : > { %v1143_v59 = vpack.c.bf16 %v1142_v55, %v1142_v55  ;;  %v1198_v25 = vsel %vm504_vm14, %v1073_v6, %v1173_v17 }
 0x3c9   : > { %v1081_v9 = vpack.c.bf16 %v1080_v2, %v1080_v2 }
 0x3ca   : > { %v1249_v0 = vsel %vm504_vm14, %v1143_v59, %v1232_v60 }
 0x3cb   : > { %v1202_v16 = vsel %vm504_vm14, %v1081_v9, %v1176_v52  ;;  %1293 = vmatpush.bf16.msra.mxu3 %v1249_v0 }
 0x3cc   : > { %1280 = vmatpush.bf16.msra.mxu2 %v1202_v16 }
 0x3cd   : > { %v1129_v22 = vpop.permute.xlu1 %1128 }
 0x3ce   : > { %v1067_v24 = vpop.permute.xlu0 %1066  ;;  %v1130_v1 = vmul.f32 %v2228_v49, %v1129_v22 }
 0x3cf   : > { %v1068_v19 = vmul.f32 %v2225_v46, %v1067_v24 }
 0x3d0   : > { %1281 = vmatpush.bf16.msra.mxu2 %v1198_v25  ;;  %v1131_v23 = vpack.c.bf16 %v1130_v1, %v1130_v1 }
 0x3d1   : > { %v1069_v31 = vpack.c.bf16 %v1068_v19, %v1068_v19 }
 0x3d2   : > { %v1225_v49 = vunpack.c.l.b16 %v1131_v23 }
 0x3d3   : > { %v1169_v13 = vunpack.c.l.b16 %v1069_v31 }
 0x3d4   : > { %v1226_v53 = vpack.c.b16 %v1225_v49, %v1225_v49 }
 0x3d5   : > { %v1170_v37 = vpack.c.b16 %v1169_v13, %v1169_v13  ;;  %v1125_v32 = vpop.permute.xlu1 %1124 }
 0x3d6   : > { %v1133_v21 = vpop.permute.xlu0 %1132  ;;  %v1126_v46 = vmul.f32 %v2236_v4, %v1125_v32 }
 0x3d7   : > { %v1134_v30 = vmul.f32 %v2238_v7, %v1133_v21  ;;  %v1194_v11 = vsel %vm504_vm14, %v1065_v35, %v1170_v37  ;;  %v1267_v7 = vpack.c.b16 %v1265_v26, %v1265_v26 }
 0x3d8   : > { %1282 = vmatpush.bf16.msra.mxu2 %v1194_v11  ;;  %v1127_v39 = vpack.c.bf16 %v1126_v46, %v1126_v46 }
 0x3d9   : > { %v1135_v28 = vpack.c.bf16 %v1134_v30, %v1134_v30 }
 0x3da   : > { %v1241_v4 = vsel %vm504_vm14, %v1127_v39, %v1226_v53 }
 0x3db   : > { %1283 = vmatmul.bf16.vlgmr.msra.gmra.mxu2 %v1266_v36  ;;  %v1245_v48 = vsel %vm504_vm14, %v1135_v28, %v1229_v50 }
 0x3dc   : > { %1294 = vmatpush.bf16.msra.mxu3 %v1245_v48 }
 0x3e0   : > { %1295 = vmatpush.bf16.msra.mxu3 %v1241_v4 }
 0x3e3   : > { %1444 = vmatmul.msk.bf16.vlgmr.msra.gmra.mxu3 %vm828_vm10, %v1267_v7 }
 0x429   : > { %v1261_v54 = vpop.permute.xlu0 %1260 }
 0x45e   : > { %v1284_v34 = vpop.f32.mrf.mxu2 }
 0x45f   : > { %v1285_v56 = vadd.f32 %v1284_v34, %v1261_v54 }
 0x466   : > { %v1286_v29 = vpop.f32.mrf.mxu2  ;;  %v1297_v27 = vpop.f32.mrf.mxu3 }
 0x467   : > { %v1298_v62 = vadd.f32 %v1297_v27, %v1285_v56 }
 0x469   : > { %v1301_v44 = vadd.f32 %v1628_v40, %v1298_v62 }
 0x46b   : > { %1302 = vst [vmem:[%s301_s26] sm:$0xff] %v1301_v44 }
 0x46c   : > { %1806 = shalt.err (!%p1803_p9)
}
 0x46d   : > { %1467 = dma.vmem_to_hbm [thread:$0]  (%p2010_p4), %s1317_s13, 128, %s1319_s27, %s1304_s14  }
 0x46e   : > { %v1299_v42 = vpop.f32.mrf.mxu3 }
 0x46f PF: > { %s1330_s10 = sand.u32 1, %s1841_s18   ;;  %p2470_p10 = scmp.ge.s32.totalorder %s1853_s21, 2 }
 0x470   : > { %s1331_s30 = scalar_lea.sflag [#allocation4], %s1330_s10 }
 0x471   : > { %p1487_p13 = pnand %p2470_p10, %p2014_p6 }
 0x473   : > { %p1488_p11 = pneg %p1487_p13 }
 0x475   : > { %1836 = dma.done.wait (%p1488_p11), %s1331_s30, 128  }
 0x476   : > { %1838 = vsyncadd (%p1488_p11), %s1331_s30, 4294967168  ;;  %p20_p0 = scmp.ge.s32.totalorder %s1984_s29, 4   ;;  %s2471_s18 = smov %s1845_s19 }
 0x477   : > { %s2472_s19 = smov %s1849_s20  ;;  %s2473_s20 = smov %s1995_s8 }
 0x478   : > { %s2474_s21 = smov %s1984_s29  ;;  %22 = sbr.rel (!%p20_p0) target bundleno = 7 (0x7), region = 101 }
 0x47d   :  { %1337 = vsyncpa [#allocation3], 1 }
 0x47e   :  { %1339 = vsyncpa [#allocation3 + $0x1], 1 }
 0x47f   :  { %1340 = vsyncpa [#allocation6], 1 }
 0x480   :  { %1341 = vsyncpa [#allocation9], 1 }
 0x481   :  { %1342 = vsyncpa [#allocation4], 1 }
 0x482   :  { %1344 = vsyncpa [#allocation4 + $0x1], 1 }

</bundles_post_ra>
